<compile_context>
chip_gen: v5e
topology: v5e:2x2
jax: 0.10.0
libtpu: 0.0.40
codegen_flags: <defaults>
</compile_context>

<pallas_src>
import functools

import jax
import jax.numpy as jnp
from jax.experimental import pallas as pl
from jax.experimental.pallas import tpu as pltpu


def _round_up(x, m):
    return ((x + m - 1) // m) * m


def _pad_axis(x, axis, target):
    pad = target - x.shape[axis]
    if pad == 0:
        return x
    cfg = [(0, 0)] * x.ndim
    cfg[axis] = (0, pad)
    return jnp.pad(x, cfg)


def regvd_kernel(feat_ref, adj_ref, mask_ref,
                 w_emb_ref, b_emb_ref, w_gnn_ref,
                 w_att_ref, b_att_ref, w_ln_ref, b_ln_ref,
                 w_dense_ref, b_dense_ref, w_out_ref, b_out_ref,
                 prob_ref, *, num_layers):
    """One batch tile of the GNNReGVD forward (ReGCN + head + sigmoid)."""
    TB, Np, Fp = feat_ref.shape
    Hp = w_emb_ref.shape[1]

    m = mask_ref[...]                                   # (TB, Np, 1) f32
    m_b = jnp.broadcast_to(m, (TB, Np, Hp))             # hoisted, reused L+2 times
    a = adj_ref[...]                                    # (TB, Np, Np) bf16

    # --- ReGCN.emb_encode: Linear(F,H), flattened to one (TB*Np, Fp) MXU dot --
    feat2d = feat_ref[...].reshape(TB * Np, Fp)          # bf16 from the wrapper
    x = jnp.dot(feat2d, w_emb_ref[...],
                preferred_element_type=jnp.float32).reshape(TB, Np, Hp)
    x = (x + b_emb_ref[...]) * m_b                       # (TB, Np, Hp) f32

    # --- residual GCN layers: x = x + relu(A @ (X @ W_l)) * mask --------------
    for l in range(num_layers):
        support = jnp.dot(x.reshape(TB * Np, Hp).astype(jnp.bfloat16),
                          w_gnn_ref[l],                  # bf16 resident weight
                          preferred_element_type=jnp.float32
                          ).reshape(TB, Np, Hp)          # X @ W_l, M = TB*Np
        agg = jnp.einsum('bnm,bmk->bnk', a, support.astype(jnp.bfloat16),
                         preferred_element_type=jnp.float32)   # A @ (X W_l)
        x = x + jnp.maximum(agg, 0.0) * m_b

    # --- soft-attention graph readout (att_op='mul') ---------------------------
    att = jax.nn.sigmoid(
        jnp.sum(x * w_att_ref[...], axis=-1, keepdims=True) + b_att_ref[...])
    h = jnp.maximum(
        jnp.dot(x.reshape(TB * Np, Hp).astype(jnp.bfloat16), w_ln_ref[...],
                preferred_element_type=jnp.float32).reshape(TB, Np, Hp)
        + b_ln_ref[...], 0.0)
    x = att * h * m_b                                    # non-negative
    # NOTE: max over masked/padded (zero) rows is valid only because x >= 0.
    g = jnp.sum(x, axis=1) * jnp.max(x, axis=1)          # (TB, Hp)

    # --- PredictionClassification: dense -> tanh -> out_proj -> sigmoid -------
    d = jnp.tanh(jnp.dot(g.astype(jnp.bfloat16), w_dense_ref[...],
                         preferred_element_type=jnp.float32) + b_dense_ref[...])
    logits = jnp.dot(d, w_out_ref[...],
                     preferred_element_type=jnp.float32) + b_out_ref[...]
    prob_ref[...] = jax.nn.sigmoid(logits)               # (TB, Cp), lane-dense


def _vmem_budget_bytes():
    """~75% of this generation's VMEM (96 MiB v5e/v6e, 48 MiB v7x)."""
    try:
        cap = int(pltpu.get_tpu_info().vmem_capacity_bytes)
    except Exception:
        cap = 64 * 2 ** 20          # conservative fallback (fits v7x)
    return (cap * 3) // 4


def _choose_batch_tile(B, Np, per_sample_bytes, fixed_bytes, vmem_budget):
    """Largest TB fitting the VMEM budget, capped to keep >= 4 grid steps
    (v7x megacore pipelining) unless that underfills the MXU M dim
    (TB*Np < 256). TB is a multiple of 8 or equal to B (output sublane
    alignment for the (TB, Cp) store)."""
    avail = max(vmem_budget - fixed_bytes, per_sample_bytes)
    tb_fit = max(1, avail // per_sample_bytes)
    tb_grid = max(1, B // 4)                     # >= 4 grid steps when possible
    tb_mxu = -(-256 // Np)                       # smallest TB filling M = 256
    tb_cap = tb_grid if tb_grid * Np >= 256 else tb_mxu
    tb = int(min(tb_fit, B, max(tb_cap, 1)))
    if tb < B:
        tb = max(8, (tb // 8) * 8)               # sublane-align the output block
        tb = min(tb, B)
    return tb


def gnn_regvd_forward(feat, adj, mask, params, *, num_layers, batch_tile=None):
    """Pads to TPU-friendly shapes, runs the batch-tiled Pallas kernel."""
    B, N, F = feat.shape
    H = params['w_emb'].shape[1]
    C = params['w_out'].shape[1]
    L = num_layers

    Np = _round_up(N, 16)        # bf16 sublane pack
    Fp = _round_up(F, 128)
    Hp = _round_up(H, 128)
    Cp = _round_up(C, 128)

    # ---- generation-aware VMEM plan and batch-tile selection -----------------
    per_sample_bytes = (
        2 * (Np * Fp * 2)        # feat tile (bf16), double-buffered
        + 2 * (Np * Np * 2)      # adj tile (bf16), double-buffered
        + 2 * (Np * 4)           # mask tile
        + 2 * (Cp * 4)           # output tile
        + 8 * (Np * Hp * 4))     # x / support / agg / h / m_b / bf16 copies
    fixed_bytes = 2 * (          # resident weights (default double-buffered)
        2 * (Fp * Hp + L * Hp * Hp + 2 * Hp * Hp)        # bf16 matmul weights
        + 4 * (Hp * Cp + 5 * Hp + Cp + 2))               # f32 biases / w_att / w_out
    vmem_budget = _vmem_budget_bytes()

    if batch_tile is None:
        TB = _choose_batch_tile(B, Np, per_sample_bytes, fixed_bytes, vmem_budget)
    else:
        TB = max(1, min(batch_tile, B))
    Bp = _round_up(B, TB)

    # ---- pad inputs (zero padding keeps padded nodes / hidden units at 0) ----
    feat_p = _pad_axis(_pad_axis(_pad_axis(feat, 0, Bp), 1, Np), 2, Fp)
    feat_p = feat_p.astype(jnp.bfloat16)                     # halve feature DMA
    adj_p = _pad_axis(_pad_axis(_pad_axis(adj, 0, Bp), 1, Np), 2, Np)
    adj_p = adj_p.astype(jnp.bfloat16)                       # halve adjacency DMA
    mask_p = _pad_axis(_pad_axis(mask, 0, Bp), 1, Np)[..., None]   # (Bp, Np, 1)

    # ---- pad weights; MXU weights pre-cast to bf16 on the host ---------------
    w_emb = _pad_axis(_pad_axis(params['w_emb'], 0, Fp), 1, Hp).astype(jnp.bfloat16)
    b_emb = _pad_axis(params['b_emb'], 1, Hp)
    w_gnn = _pad_axis(_pad_axis(params['w_gnn'], 1, Hp), 2, Hp).astype(jnp.bfloat16)
    w_att = _pad_axis(params['w_att'], 1, Hp)
    b_att = params['b_att']
    w_ln = _pad_axis(_pad_axis(params['w_ln'], 0, Hp), 1, Hp).astype(jnp.bfloat16)
    b_ln = _pad_axis(params['b_ln'], 1, Hp)
    w_dense = _pad_axis(_pad_axis(params['w_dense'], 0, Hp), 1, Hp).astype(jnp.bfloat16)
    b_dense = _pad_axis(params['b_dense'], 1, Hp)
    w_out = _pad_axis(_pad_axis(params['w_out'], 0, Hp), 1, Cp)
    b_out = _pad_axis(params['b_out'], 1, Cp)

    grid = (Bp // TB,)
    batch_specs = [
        pl.BlockSpec((TB, Np, Fp), lambda b: (b, 0, 0)),   # feat (bf16)
        pl.BlockSpec((TB, Np, Np), lambda b: (b, 0, 0)),   # adj (bf16)
        pl.BlockSpec((TB, Np, 1), lambda b: (b, 0, 0)),    # mask (f32)
    ]
    weight_arrays = (w_emb, b_emb, w_gnn, w_att, b_att, w_ln, b_ln,
                     w_dense, b_dense, w_out, b_out)
    weight_specs = [pl.BlockSpec(w.shape, lambda b, _nd=w.ndim: (0,) * _nd)
                    for w in weight_arrays]

    kernel = functools.partial(regvd_kernel, num_layers=L)
    prob_p = pl.pallas_call(
        kernel,
        out_shape=jax.ShapeDtypeStruct((Bp, Cp), jnp.float32),
        grid=grid,
        in_specs=batch_specs + weight_specs,
        out_specs=pl.BlockSpec((TB, Cp), lambda b: (b, 0)),
        compiler_params=pltpu.CompilerParams(
            dimension_semantics=("parallel",),
            vmem_limit_bytes=int(vmem_budget)),
    )(feat_p, adj_p, mask_p, *weight_arrays)

    return prob_p[:B, :C]


def make_params(key, feature_dim, hidden, num_layers, num_classes):
    ks = jax.random.split(key, 6)
    s = 0.1
    return dict(
        w_emb=s * jax.random.normal(ks[0], (feature_dim, hidden), jnp.float32),
        b_emb=jnp.zeros((1, hidden), jnp.float32),
        w_gnn=s * jax.random.normal(ks[1], (num_layers, hidden, hidden), jnp.float32),
        w_att=s * jax.random.normal(ks[2], (1, hidden), jnp.float32),
        b_att=jnp.zeros((1, 1), jnp.float32),
        w_ln=s * jax.random.normal(ks[3], (hidden, hidden), jnp.float32),
        b_ln=jnp.zeros((1, hidden), jnp.float32),
        w_dense=s * jax.random.normal(ks[4], (hidden, hidden), jnp.float32),
        b_dense=jnp.zeros((1, hidden), jnp.float32),
        w_out=s * jax.random.normal(ks[5], (hidden, num_classes), jnp.float32),
        b_out=jnp.zeros((1, num_classes), jnp.float32),
    )


if __name__ == "__main__":
    # small shapes: batch=8, nodes=16, feature_dim=32, hidden=32,
    # 2 GNN layers, 2 classes
    B, N, F, H, L, C = 8, 16, 32, 32, 2, 2

    key = jax.random.PRNGKey(0)
    k_feat, k_adj, k_par = jax.random.split(key, 3)

    # node features (stand-in for preprocess_features(build_graph(...)))
    feat = jax.random.normal(k_feat, (B, N, F), jnp.float32)

    # deterministic synthetic symmetric, self-looped, row-normalized adjacency
    raw = (jax.random.uniform(k_adj, (B, N, N)) > 0.7).astype(jnp.float32)
    adjm = jnp.maximum(raw, jnp.transpose(raw, (0, 2, 1)))
    adjm = jnp.minimum(adjm + jnp.eye(N, dtype=jnp.float32)[None], 1.0)
    adj = adjm / jnp.sum(adjm, axis=-1, keepdims=True)
    mask = jnp.ones((B, N), jnp.float32)

    params = make_params(k_par, F, H, L, C)

    prob = gnn_regvd_forward(feat, adj, mask, params, num_layers=L)
    prob = jax.block_until_ready(prob)

    # labels branch of the forward (plain-JAX glue, mirrors the PyTorch loss)
    labels = jnp.array([0., 1., 0., 1., 1., 0., 1., 0.], jnp.float32)
    loss = -(jnp.log(prob[:, 0] + 1e-10) * labels
             + jnp.log((1.0 - prob)[:, 0] + 1e-10) * (1.0 - labels)).mean()
    jax.block_until_ready(loss)

    assert prob.shape == (B, C)
    assert bool(jnp.all(jnp.isfinite(prob))) and bool(jnp.isfinite(loss))
    assert bool(jnp.all((prob >= 0.0) & (prob <= 1.0)))
    print("KERNEL_OK")
</pallas_src>

<mosaic_0001>
module attributes {stable_mosaic.version = 11 : i64} {
  func.func @regvd_kernel(%arg0: i32, %arg1: memref<8x16x128xbf16, #tpu.memory_space<vmem>>, %arg2: memref<8x16x16xbf16, #tpu.memory_space<vmem>>, %arg3: memref<8x16x1xf32, #tpu.memory_space<vmem>>, %arg4: memref<128x128xbf16, #tpu.memory_space<vmem>>, %arg5: memref<1x128xf32, #tpu.memory_space<vmem>>, %arg6: memref<2x128x128xbf16, #tpu.memory_space<vmem>>, %arg7: memref<1x128xf32, #tpu.memory_space<vmem>>, %arg8: memref<1x1xf32, #tpu.memory_space<vmem>>, %arg9: memref<128x128xbf16, #tpu.memory_space<vmem>>, %arg10: memref<1x128xf32, #tpu.memory_space<vmem>>, %arg11: memref<128x128xbf16, #tpu.memory_space<vmem>>, %arg12: memref<1x128xf32, #tpu.memory_space<vmem>>, %arg13: memref<128x128xf32, #tpu.memory_space<vmem>>, %arg14: memref<1x128xf32, #tpu.memory_space<vmem>>, %arg15: memref<8x128xf32, #tpu.memory_space<vmem>>) attributes {dimension_semantics = [#tpu.dimension_semantics<parallel>], iteration_bounds = array<i64: 1>, scalar_prefetch = 0 : i64, scratch_operands = 0 : i64, tpu.core_type = #tpu.core_type<tc>, window_params = [{transform_indices = @transform_0, window_bounds = array<i64: 8, 16, 128>}, {transform_indices = @transform_1, window_bounds = array<i64: 8, 16, 16>}, {transform_indices = @transform_2, window_bounds = array<i64: 8, 16, 1>}, {pipeline_mode = #tpu.pipeline_mode<synchronous>, transform_indices = @transform_3, window_bounds = array<i64: 128, 128>}, {pipeline_mode = #tpu.pipeline_mode<synchronous>, transform_indices = @transform_4, window_bounds = array<i64: 1, 128>}, {pipeline_mode = #tpu.pipeline_mode<synchronous>, transform_indices = @transform_5, window_bounds = array<i64: 2, 128, 128>}, {pipeline_mode = #tpu.pipeline_mode<synchronous>, transform_indices = @transform_6, window_bounds = array<i64: 1, 128>}, {pipeline_mode = #tpu.pipeline_mode<synchronous>, transform_indices = @transform_7, window_bounds = array<i64: 1, 1>}, {pipeline_mode = #tpu.pipeline_mode<synchronous>, transform_indices = @transform_8, window_bounds = array<i64: 128, 128>}, {pipeline_mode = #tpu.pipeline_mode<synchronous>, transform_indices = @transform_9, window_bounds = array<i64: 1, 128>}, {pipeline_mode = #tpu.pipeline_mode<synchronous>, transform_indices = @transform_10, window_bounds = array<i64: 128, 128>}, {pipeline_mode = #tpu.pipeline_mode<synchronous>, transform_indices = @transform_11, window_bounds = array<i64: 1, 128>}, {pipeline_mode = #tpu.pipeline_mode<synchronous>, transform_indices = @transform_12, window_bounds = array<i64: 128, 128>}, {pipeline_mode = #tpu.pipeline_mode<synchronous>, transform_indices = @transform_13, window_bounds = array<i64: 1, 128>}, {transform_indices = @transform_14, window_bounds = array<i64: 8, 128>}]} {
    %c0 = arith.constant 0 : index
    %c0_0 = arith.constant 0 : index
    %c0_1 = arith.constant 0 : index
    %0 = vector.load %arg3[%c0, %c0_0, %c0_1] : memref<8x16x1xf32, #tpu.memory_space<vmem>>, vector<8x16x1xf32>
    %1 = vector.shape_cast %0 : vector<8x16x1xf32> to vector<8x16x1xf32>
    %2 = vector.broadcast %1 : vector<8x16x1xf32> to vector<8x16x128xf32>
    %c0_2 = arith.constant 0 : index
    %c0_3 = arith.constant 0 : index
    %c0_4 = arith.constant 0 : index
    %3 = vector.load %arg2[%c0_2, %c0_3, %c0_4] : memref<8x16x16xbf16, #tpu.memory_space<vmem>>, vector<8x16x16xbf16>
    %c0_5 = arith.constant 0 : index
    %c0_6 = arith.constant 0 : index
    %c0_7 = arith.constant 0 : index
    %4 = vector.load %arg1[%c0_5, %c0_6, %c0_7] : memref<8x16x128xbf16, #tpu.memory_space<vmem>>, vector<8x16x128xbf16>
    %5 = vector.shape_cast %4 : vector<8x16x128xbf16> to vector<128x128xbf16>
    %c0_8 = arith.constant 0 : index
    %c0_9 = arith.constant 0 : index
    %6 = vector.load %arg4[%c0_8, %c0_9] : memref<128x128xbf16, #tpu.memory_space<vmem>>, vector<128x128xbf16>
    %cst = arith.constant dense<0.000000e+00> : vector<128x128xf32>
    %7 = tpu.matmul %5, %6, %cst {dimension_numbers = #tpu.dot_dimension_numbers<[1], [0], [0], [1], [0, 0, 1, 1], [], []>} : vector<128x128xbf16>, vector<128x128xbf16>, vector<128x128xf32> -> vector<128x128xf32>
    %8 = vector.shape_cast %7 : vector<128x128xf32> to vector<8x16x128xf32>
    %c0_10 = arith.constant 0 : index
    %c0_11 = arith.constant 0 : index
    %9 = vector.load %arg5[%c0_10, %c0_11] : memref<1x128xf32, #tpu.memory_space<vmem>>, vector<1x128xf32>
    %10 = vector.shape_cast %9 : vector<1x128xf32> to vector<1x1x128xf32>
    %11 = vector.broadcast %10 : vector<1x1x128xf32> to vector<8x16x128xf32>
    %12 = arith.addf %8, %11 : vector<8x16x128xf32>
    %13 = arith.mulf %12, %2 : vector<8x16x128xf32>
    %14 = vector.shape_cast %13 : vector<8x16x128xf32> to vector<128x128xf32>
    %15 = arith.truncf %14 : vector<128x128xf32> to vector<128x128xbf16>
    %c0_12 = arith.constant 0 : index
    %c0_13 = arith.constant 0 : index
    %c0_14 = arith.constant 0 : index
    %16 = vector.load %arg6[%c0_12, %c0_13, %c0_14] : memref<2x128x128xbf16, #tpu.memory_space<vmem>>, vector<1x128x128xbf16>
    %17 = vector.shape_cast %16 : vector<1x128x128xbf16> to vector<128x128xbf16>
    %cst_15 = arith.constant dense<0.000000e+00> : vector<128x128xf32>
    %18 = tpu.matmul %15, %17, %cst_15 {dimension_numbers = #tpu.dot_dimension_numbers<[1], [0], [0], [1], [0, 0, 1, 1], [], []>} : vector<128x128xbf16>, vector<128x128xbf16>, vector<128x128xf32> -> vector<128x128xf32>
    %19 = vector.shape_cast %18 : vector<128x128xf32> to vector<8x16x128xf32>
    %20 = arith.truncf %19 : vector<8x16x128xf32> to vector<8x16x128xbf16>
    "tpu.trace_start"() <{level = 10 : i32, message = "bnm,bmk->bnk"}> : () -> ()
    %cst_16 = arith.constant dense<0.000000e+00> : vector<8x16x128xf32>
    %21 = tpu.matmul %3, %20, %cst_16 {dimension_numbers = #tpu.dot_dimension_numbers<[2], [1], [1], [2], [0, 0, 0, 1, 1, 2], [0], [0]>} : vector<8x16x16xbf16>, vector<8x16x128xbf16>, vector<8x16x128xf32> -> vector<8x16x128xf32>
    "tpu.trace_stop"() : () -> ()
    %cst_17 = arith.constant 0.000000e+00 : f32
    %22 = vector.broadcast %cst_17 : f32 to vector<8x16x128xf32>
    %23 = arith.maximumf %21, %22 : vector<8x16x128xf32>
    %24 = arith.mulf %23, %2 : vector<8x16x128xf32>
    %25 = arith.addf %13, %24 : vector<8x16x128xf32>
    %26 = vector.shape_cast %25 : vector<8x16x128xf32> to vector<128x128xf32>
    %27 = arith.truncf %26 : vector<128x128xf32> to vector<128x128xbf16>
    %c1 = arith.constant 1 : index
    %c0_18 = arith.constant 0 : index
    %c0_19 = arith.constant 0 : index
    %28 = vector.load %arg6[%c1, %c0_18, %c0_19] : memref<2x128x128xbf16, #tpu.memory_space<vmem>>, vector<1x128x128xbf16>
    %29 = vector.shape_cast %28 : vector<1x128x128xbf16> to vector<128x128xbf16>
    %cst_20 = arith.constant dense<0.000000e+00> : vector<128x128xf32>
    %30 = tpu.matmul %27, %29, %cst_20 {dimension_numbers = #tpu.dot_dimension_numbers<[1], [0], [0], [1], [0, 0, 1, 1], [], []>} : vector<128x128xbf16>, vector<128x128xbf16>, vector<128x128xf32> -> vector<128x128xf32>
    %31 = vector.shape_cast %30 : vector<128x128xf32> to vector<8x16x128xf32>
    %32 = arith.truncf %31 : vector<8x16x128xf32> to vector<8x16x128xbf16>
    "tpu.trace_start"() <{level = 10 : i32, message = "bnm,bmk->bnk"}> : () -> ()
    %cst_21 = arith.constant dense<0.000000e+00> : vector<8x16x128xf32>
    %33 = tpu.matmul %3, %32, %cst_21 {dimension_numbers = #tpu.dot_dimension_numbers<[2], [1], [1], [2], [0, 0, 0, 1, 1, 2], [0], [0]>} : vector<8x16x16xbf16>, vector<8x16x128xbf16>, vector<8x16x128xf32> -> vector<8x16x128xf32>
    "tpu.trace_stop"() : () -> ()
    %cst_22 = arith.constant 0.000000e+00 : f32
    %34 = vector.broadcast %cst_22 : f32 to vector<8x16x128xf32>
    %35 = arith.maximumf %33, %34 : vector<8x16x128xf32>
    %36 = arith.mulf %35, %2 : vector<8x16x128xf32>
    %37 = arith.addf %25, %36 : vector<8x16x128xf32>
    %c0_23 = arith.constant 0 : index
    %c0_24 = arith.constant 0 : index
    %38 = vector.load %arg7[%c0_23, %c0_24] : memref<1x128xf32, #tpu.memory_space<vmem>>, vector<1x128xf32>
    %39 = vector.shape_cast %38 : vector<1x128xf32> to vector<1x1x128xf32>
    %40 = vector.broadcast %39 : vector<1x1x128xf32> to vector<8x16x128xf32>
    %41 = arith.mulf %37, %40 : vector<8x16x128xf32>
    %cst_25 = arith.constant dense<0.000000e+00> : vector<8x16xf32>
    %42 = vector.multi_reduction <add>, %41, %cst_25 [2] : vector<8x16x128xf32> to vector<8x16xf32>
    %43 = vector.shape_cast %42 : vector<8x16xf32> to vector<8x16x1xf32>
    %c0_26 = arith.constant 0 : index
    %c0_27 = arith.constant 0 : index
    %44 = vector.load %arg8[%c0_26, %c0_27] : memref<1x1xf32, #tpu.memory_space<vmem>>, vector<1x1xf32>
    %45 = vector.shape_cast %44 : vector<1x1xf32> to vector<1x1x1xf32>
    %46 = vector.broadcast %45 : vector<1x1x1xf32> to vector<8x16x1xf32>
    %47 = arith.addf %43, %46 : vector<8x16x1xf32>
    %48 = arith.negf %47 : vector<8x16x1xf32>
    %49 = math.exp %48 : vector<8x16x1xf32>
    %cst_28 = arith.constant 1.000000e+00 : f32
    %50 = vector.broadcast %cst_28 : f32 to vector<8x16x1xf32>
    %51 = arith.addf %50, %49 : vector<8x16x1xf32>
    %52 = arith.divf %50, %51 : vector<8x16x1xf32>
    %53 = vector.shape_cast %37 : vector<8x16x128xf32> to vector<128x128xf32>
    %54 = arith.truncf %53 : vector<128x128xf32> to vector<128x128xbf16>
    %c0_29 = arith.constant 0 : index
    %c0_30 = arith.constant 0 : index
    %55 = vector.load %arg9[%c0_29, %c0_30] : memref<128x128xbf16, #tpu.memory_space<vmem>>, vector<128x128xbf16>
    %cst_31 = arith.constant dense<0.000000e+00> : vector<128x128xf32>
    %56 = tpu.matmul %54, %55, %cst_31 {dimension_numbers = #tpu.dot_dimension_numbers<[1], [0], [0], [1], [0, 0, 1, 1], [], []>} : vector<128x128xbf16>, vector<128x128xbf16>, vector<128x128xf32> -> vector<128x128xf32>
    %57 = vector.shape_cast %56 : vector<128x128xf32> to vector<8x16x128xf32>
    %c0_32 = arith.constant 0 : index
    %c0_33 = arith.constant 0 : index
    %58 = vector.load %arg10[%c0_32, %c0_33] : memref<1x128xf32, #tpu.memory_space<vmem>>, vector<1x128xf32>
    %59 = vector.shape_cast %58 : vector<1x128xf32> to vector<1x1x128xf32>
    %60 = vector.broadcast %59 : vector<1x1x128xf32> to vector<8x16x128xf32>
    %61 = arith.addf %57, %60 : vector<8x16x128xf32>
    %cst_34 = arith.constant 0.000000e+00 : f32
    %62 = vector.broadcast %cst_34 : f32 to vector<8x16x128xf32>
    %63 = arith.maximumf %61, %62 : vector<8x16x128xf32>
    %64 = vector.broadcast %52 : vector<8x16x1xf32> to vector<8x16x128xf32>
    %65 = arith.mulf %64, %63 : vector<8x16x128xf32>
    %66 = arith.mulf %65, %2 : vector<8x16x128xf32>
    %cst_35 = arith.constant dense<0.000000e+00> : vector<8x128xf32>
    %67 = vector.multi_reduction <add>, %66, %cst_35 [1] : vector<8x16x128xf32> to vector<8x128xf32>
    %cst_36 = arith.constant dense<0xFF800000> : vector<8x128xf32>
    %68 = vector.multi_reduction <maximumf>, %66, %cst_36 [1] : vector<8x16x128xf32> to vector<8x128xf32>
    %69 = arith.mulf %67, %68 : vector<8x128xf32>
    %70 = arith.truncf %69 : vector<8x128xf32> to vector<8x128xbf16>
    %c0_37 = arith.constant 0 : index
    %c0_38 = arith.constant 0 : index
    %71 = vector.load %arg11[%c0_37, %c0_38] : memref<128x128xbf16, #tpu.memory_space<vmem>>, vector<128x128xbf16>
    %cst_39 = arith.constant dense<0.000000e+00> : vector<8x128xf32>
    %72 = tpu.matmul %70, %71, %cst_39 {dimension_numbers = #tpu.dot_dimension_numbers<[1], [0], [0], [1], [0, 0, 1, 1], [], []>} : vector<8x128xbf16>, vector<128x128xbf16>, vector<8x128xf32> -> vector<8x128xf32>
    %c0_40 = arith.constant 0 : index
    %c0_41 = arith.constant 0 : index
    %73 = vector.load %arg12[%c0_40, %c0_41] : memref<1x128xf32, #tpu.memory_space<vmem>>, vector<1x128xf32>
    %74 = vector.broadcast %73 : vector<1x128xf32> to vector<8x128xf32>
    %75 = arith.addf %72, %74 : vector<8x128xf32>
    %76 = math.tanh %75 : vector<8x128xf32>
    %c0_42 = arith.constant 0 : index
    %c0_43 = arith.constant 0 : index
    %77 = vector.load %arg13[%c0_42, %c0_43] : memref<128x128xf32, #tpu.memory_space<vmem>>, vector<128x128xf32>
    %cst_44 = arith.constant dense<0.000000e+00> : vector<8x128xf32>
    %78 = tpu.matmul %76, %77, %cst_44 {dimension_numbers = #tpu.dot_dimension_numbers<[1], [0], [0], [1], [0, 0, 1, 1], [], []>} : vector<8x128xf32>, vector<128x128xf32>, vector<8x128xf32> -> vector<8x128xf32>
    %c0_45 = arith.constant 0 : index
    %c0_46 = arith.constant 0 : index
    %79 = vector.load %arg14[%c0_45, %c0_46] : memref<1x128xf32, #tpu.memory_space<vmem>>, vector<1x128xf32>
    %80 = vector.broadcast %79 : vector<1x128xf32> to vector<8x128xf32>
    %81 = arith.addf %78, %80 : vector<8x128xf32>
    %82 = arith.negf %81 : vector<8x128xf32>
    %83 = math.exp %82 : vector<8x128xf32>
    %cst_47 = arith.constant 1.000000e+00 : f32
    %84 = vector.broadcast %cst_47 : f32 to vector<8x128xf32>
    %85 = arith.addf %84, %83 : vector<8x128xf32>
    %86 = arith.divf %84, %85 : vector<8x128xf32>
    %c0_48 = arith.constant 0 : index
    %c0_49 = arith.constant 0 : index
    %87 = vector.load %arg15[%c0_48, %c0_49] : memref<8x128xf32, #tpu.memory_space<vmem>>, vector<8x128xf32>
    tpu.vector_store %arg15[%c0_48, %c0_49], %86 {strides = array<i32>} : memref<8x128xf32, #tpu.memory_space<vmem>>, vector<8x128xf32>,
    return
  }
  func.func @transform_0(%arg0: i32) -> (i32, i32, i32) {
    %c0_i32 = arith.constant 0 : i32
    %c0_i32_0 = arith.constant 0 : i32
    %c0_i32_1 = arith.constant 0 : i32
    return %arg0, %c0_i32, %c0_i32_0 : i32, i32, i32
  }
  func.func @transform_1(%arg0: i32) -> (i32, i32, i32) {
    %c0_i32 = arith.constant 0 : i32
    %c0_i32_0 = arith.constant 0 : i32
    %c0_i32_1 = arith.constant 0 : i32
    return %arg0, %c0_i32, %c0_i32_0 : i32, i32, i32
  }
  func.func @transform_2(%arg0: i32) -> (i32, i32, i32) {
    %c0_i32 = arith.constant 0 : i32
    %c0_i32_0 = arith.constant 0 : i32
    %c0_i32_1 = arith.constant 0 : i32
    return %arg0, %c0_i32, %c0_i32_0 : i32, i32, i32
  }
  func.func @transform_3(%arg0: i32) -> (i32, i32) {
    %c0_i32 = arith.constant 0 : i32
    %c0_i32_0 = arith.constant 0 : i32
    %c0_i32_1 = arith.constant 0 : i32
    return %c0_i32, %c0_i32_0 : i32, i32
  }
  func.func @transform_4(%arg0: i32) -> (i32, i32) {
    %c0_i32 = arith.constant 0 : i32
    %c0_i32_0 = arith.constant 0 : i32
    %c0_i32_1 = arith.constant 0 : i32
    return %c0_i32, %c0_i32_0 : i32, i32
  }
  func.func @transform_5(%arg0: i32) -> (i32, i32, i32) {
    %c0_i32 = arith.constant 0 : i32
    %c0_i32_0 = arith.constant 0 : i32
    %c0_i32_1 = arith.constant 0 : i32
    %c0_i32_2 = arith.constant 0 : i32
    return %c0_i32, %c0_i32_0, %c0_i32_1 : i32, i32, i32
  }
  func.func @transform_6(%arg0: i32) -> (i32, i32) {
    %c0_i32 = arith.constant 0 : i32
    %c0_i32_0 = arith.constant 0 : i32
    %c0_i32_1 = arith.constant 0 : i32
    return %c0_i32, %c0_i32_0 : i32, i32
  }
  func.func @transform_7(%arg0: i32) -> (i32, i32) {
    %c0_i32 = arith.constant 0 : i32
    %c0_i32_0 = arith.constant 0 : i32
    %c0_i32_1 = arith.constant 0 : i32
    return %c0_i32, %c0_i32_0 : i32, i32
  }
  func.func @transform_8(%arg0: i32) -> (i32, i32) {
    %c0_i32 = arith.constant 0 : i32
    %c0_i32_0 = arith.constant 0 : i32
    %c0_i32_1 = arith.constant 0 : i32
    return %c0_i32, %c0_i32_0 : i32, i32
  }
  func.func @transform_9(%arg0: i32) -> (i32, i32) {
    %c0_i32 = arith.constant 0 : i32
    %c0_i32_0 = arith.constant 0 : i32
    %c0_i32_1 = arith.constant 0 : i32
    return %c0_i32, %c0_i32_0 : i32, i32
  }
  func.func @transform_10(%arg0: i32) -> (i32, i32) {
    %c0_i32 = arith.constant 0 : i32
    %c0_i32_0 = arith.constant 0 : i32
    %c0_i32_1 = arith.constant 0 : i32
    return %c0_i32, %c0_i32_0 : i32, i32
  }
  func.func @transform_11(%arg0: i32) -> (i32, i32) {
    %c0_i32 = arith.constant 0 : i32
    %c0_i32_0 = arith.constant 0 : i32
    %c0_i32_1 = arith.constant 0 : i32
    return %c0_i32, %c0_i32_0 : i32, i32
  }
  func.func @transform_12(%arg0: i32) -> (i32, i32) {
    %c0_i32 = arith.constant 0 : i32
    %c0_i32_0 = arith.constant 0 : i32
    %c0_i32_1 = arith.constant 0 : i32
    return %c0_i32, %c0_i32_0 : i32, i32
  }
  func.func @transform_13(%arg0: i32) -> (i32, i32) {
    %c0_i32 = arith.constant 0 : i32
    %c0_i32_0 = arith.constant 0 : i32
    %c0_i32_1 = arith.constant 0 : i32
    return %c0_i32, %c0_i32_0 : i32, i32
  }
  func.func @transform_14(%arg0: i32) -> (i32, i32) {
    %c0_i32 = arith.constant 0 : i32
    %c0_i32_0 = arith.constant 0 : i32
    return %arg0, %c0_i32 : i32, i32
  }
}

</mosaic_0001>

<bundles_post_ra>
// kernel: tpu_custom_call.1
= control target key start
LH: loop header
LB: loop body
LE: loop exit
PB: predicated region body
PF: predicated region fallthrough
CT: control target
= control target key end

     0   :  { %s3383_s0 = inlined_call_operand.hbm [shape: bf16[8,16,128], index: 0, kind: input, shape index: {}]   ;;  %s3384_s1 = inlined_call_operand.hbm [shape: bf16[8,16,16], index: 1, kind: input, shape index: {}]   ;;  %s3385_s2 = inlined_call_operand.vmem [shape: f32[8,16,1], index: 2, kind: input, shape index: {}]   ;;  %s3386_s3 = inlined_call_operand.hbm [shape: bf16[128,128], index: 3, kind: input, shape index: {}]   ;;  %s3387_s4 = inlined_call_operand.vmem [shape: f32[1,128], index: 4, kind: input, shape index: {}]   ;;  %s3388_s5 = inlined_call_operand.vmem [shape: bf16[2,128,128], index: 5, kind: input, shape index: {}]   ;;  %s3389_s6 = inlined_call_operand.vmem [shape: f32[1,128], index: 6, kind: input, shape index: {}]   ;;  %s3390_s7 = inlined_call_operand.<no memory space> [shape: f32[1,1], index: 7, kind: input, shape index: {}]   ;;  %s3391_s8 = inlined_call_operand.hbm [shape: bf16[128,128], index: 8, kind: input, shape index: {}]   ;;  %s3392_s9 = inlined_call_operand.vmem [shape: f32[1,128], index: 9, kind: input, shape index: {}]   ;;  %s3393_s10 = inlined_call_operand.hbm [shape: bf16[128,128], index: 10, kind: input, shape index: {}]   ;;  %s3394_s11 = inlined_call_operand.vmem [shape: f32[1,128], index: 11, kind: input, shape index: {}]   ;;  %s3395_s12 = inlined_call_operand.hbm [shape: f32[128,128], index: 12, kind: input, shape index: {}]   ;;  %s3396_s13 = inlined_call_operand.vmem [shape: f32[1,128], index: 13, kind: input, shape index: {}]   ;;  %s3397_s14 = inlined_call_operand.hbm [shape: f32[8,128], index: 14, kind: output, shape index: {}]  }
   0x1   :  { %v19_v0 = vstv %s3390_s7 }
   0x2   :  { %20 = vst [vmem:[#allocation2] sm:$0x1] %v19_v0 }
   0x3   :  { %21 = vsyncpa [#allocation4], 0 }
   0x4   :  { %22 = vsyncpa [#allocation7], 0 }
   0x5   :  { %23 = vsyncpa [#allocation10], 0 }
   0x6   :  { %24 = vsyncpa [#allocation13], 0 }
   0x7   :  { %25 = vsyncpa [#allocation5], 0  ;;  %s43_s17 = sshll.u32 %s3384_s1, 4  ;;  %s2799_s18 = smov [#allocation6]   ;;  %s44_s17 = int_to_ptr.hbm [resolvable:$true] %s43_s17 }
   0x8   :  { %s45_s19 = sshll.u32 %s2799_s18, 4  ;;  %s79_s22 = sshll.u32 %s3391_s8, 4  ;;  %s46_s19 = int_to_ptr.vmem [resolvable:$true] %s45_s19  ;;  %s80_s22 = int_to_ptr.hbm [resolvable:$true] %s79_s22 }
   0x9   :  { %s2800_s23 = smov 64   ;;  %s2801_s7 = smov 4  }
   0xa   :  { %51 = dma.hbm_to_vmem [thread:$0]  %s44_s17, 1024, %s46_s19, [#allocation7], %s2800_s23, %s2800_s23, %s2801_s7  }
   0xb   :  { %s2802_s24 = smov [#allocation9]   ;;  %s30_s1 = sshll.u32 %s3383_s0, 4  ;;  %s31_s1 = int_to_ptr.hbm [resolvable:$true] %s30_s1 }
   0xc   :  { %s81_s25 = sshll.u32 %s2802_s24, 4  ;;  %s58_s29 = sshll.u32 %s3386_s3, 4  ;;  %s82_s25 = int_to_ptr.vmem [resolvable:$true] %s81_s25  ;;  %s59_s29 = int_to_ptr.hbm [resolvable:$true] %s58_s29 }
   0xd   :  { %87 = dma.hbm_to_vmem [thread:$0]  %s80_s22, 1024, %s82_s25, [#allocation10], %s2800_s23, %s2800_s23, %s2801_s7  }
   0xe   :  { %s2803_s30 = smov [#allocation3]   ;;  %s2804_s16 = smov [#allocation8]  }
   0xf   :  { %s32_s15 = sshll.u32 %s2803_s30, 4  ;;  %s60_s0 = sshll.u32 %s2804_s16, 4  ;;  %s33_s15 = int_to_ptr.vmem [resolvable:$true] %s32_s15  ;;  %s61_s0 = int_to_ptr.vmem [resolvable:$true] %s60_s0 }
  0x10   :  { %38 = dma.hbm_to_vmem [thread:$0]  %s31_s1, 1024, %s33_s15, [#allocation4], %s2800_s23, %s2800_s23, %s2801_s7  }
  0x11   :  { %s94_s19 = sshll.u32 %s3393_s10, 4  ;;  %s109_s21 = sshll.u32 %s3395_s12, 4  ;;  %s95_s19 = int_to_ptr.hbm [resolvable:$true] %s94_s19  ;;  %s110_s21 = int_to_ptr.hbm [resolvable:$true] %s109_s21 }
  0x12   :  { %66 = dma.hbm_to_vmem [thread:$0]  %s59_s29, 1024, %s61_s0, [#allocation7], %s2800_s23, %s2800_s23, %s2801_s7  }
  0x13   :  { %s2805_s22 = smov [#allocation11]   ;;  %s2806_s25 = smov [#allocation12]  }
  0x14   :  { %s96_s24 = sshll.u32 %s2805_s22, 4  ;;  %s111_s10 = sshll.u32 %s2806_s25, 4  ;;  %s97_s24 = int_to_ptr.vmem [resolvable:$true] %s96_s24  ;;  %s112_s10 = int_to_ptr.vmem [resolvable:$true] %s111_s10 }
  0x15   :  { %102 = dma.hbm_to_vmem [thread:$0]  %s95_s19, 1024, %s97_s24, [#allocation10], %s2800_s23, %s2800_s23, %s2801_s7  }
  0x16   :  { %s2807_s26 = smov 128   ;;  %s2808_s27 = smov 8  }
  0x17   :  { %117 = dma.hbm_to_vmem [thread:$0]  %s110_s21, 2048, %s112_s10, [#allocation13], %s2807_s26, %s2807_s26, %s2808_s27  }
  0x18   :  { %2789 = dma.done.wait [#allocation4], 1024  }
  0x19   :  { %2790 = vsyncadd [#allocation4], 4294966272 }
  0x1a   :  { %2791 = dma.done.wait [#allocation7], 2048  }
  0x1b   :  { %2792 = vsyncadd [#allocation7], 4294965248 }
  0x1c   :  { %2793 = dma.done.wait [#allocation10], 2048  }
  0x1d   :  { %2794 = vsyncadd [#allocation10], 4294965248 }
  0x1e   :  { %2795 = dma.done.wait [#allocation13], 2048  }
  0x1f   :  { %2796 = vsyncadd [#allocation13], 4294965248  ;;  %v2809_v1 = vmov 0   ;;  %v2489_v2 = vld [vmem:[#allocation8 + $0x38] sm:$0xff]  ;;  %v2488_v4 = vld [vmem:[#allocation8 + $0x30] sm:$0xff]  ;;  %vm618_vm0 = vcmask 130048  }
  0x20   :  { %2542 = vset.pattern.permute.xlu0 %v2809_v1  ;;  %2543 = vset.pattern.permute.xlu1 %v2809_v1  ;;  %v145_v3 = vld [vmem:[%s3385_s2] sm:$0xff]  ;;  %v147_v5 = vld [vmem:[%s3385_s2 + $0x10] sm:$0xff]  ;;  %v146_v7 = vld [vmem:[%s3385_s2 + $0x8] sm:$0xff] }
  0x21   :  { %2544 = vset.pattern.permute.xlu2 %v2809_v1  ;;  %163 = vperm.xlu0 %2542, %v145_v3   ;;  %v2487_v6 = vld [vmem:[#allocation8 + $0x28] sm:$0xff]  ;;  %v148_v8 = vld [vmem:[%s3385_s2 + $0x18] sm:$0xff]  ;;  %v2486_v9 = vld [vmem:[#allocation8 + $0x20] sm:$0xff] }
  0x22   :  { %385 = vmatpush.bf16.msra.mxu0 %v2489_v2  ;;  %173 = vperm.xlu1 %2543, %v147_v5   ;;  %v2485_v10 = vld [vmem:[#allocation8 + $0x18] sm:$0xff]  ;;  %v151_v11 = vld [vmem:[%s3385_s2 + $0x30] sm:$0xff]  ;;  %v154_v15 = vld [vmem:[%s3385_s2 + $0x48] sm:$0xff] }
  0x23   :  { %v152_v12 = vld [vmem:[%s3385_s2 + $0x38] sm:$0xff]  ;;  %v2483_v14 = vld [vmem:[#allocation8 + $0x8] sm:$0xff]  ;;  %v2482_v17 = vld [vmem:[#allocation8] sm:$0xff] }
  0x24   :  { %v2484_v13 = vld [vmem:[#allocation8 + $0x10] sm:$0xff]  ;;  %v2474_v18 = vld [vmem:[#allocation3] sm:$0xff]  ;;  %v2475_v24 = vld [vmem:[#allocation3 + $0x8] sm:$0xff] }
  0x25   :  { %v155_v16 = vld [vmem:[%s3385_s2 + $0x50] sm:$0xff]  ;;  %v157_v19 = vld [vmem:[%s3385_s2 + $0x60] sm:$0xff]  ;;  %v158_v20 = vld [vmem:[%s3385_s2 + $0x68] sm:$0xff] }
  0x26   :  { %386 = vmatpush.bf16.msra.mxu0 %v2488_v4  ;;  %v149_v21 = vld [vmem:[%s3385_s2 + $0x20] sm:$0xff]  ;;  %v160_v22 = vld [vmem:[%s3385_s2 + $0x78] sm:$0xff]  ;;  %v150_v23 = vld [vmem:[%s3385_s2 + $0x28] sm:$0xff] }
  0x27   :  { %183 = vperm.xlu2 %2544, %v149_v21   ;;  %v153_v25 = vld [vmem:[%s3385_s2 + $0x40] sm:$0xff]  ;;  %v156_v26 = vld [vmem:[%s3385_s2 + $0x58] sm:$0xff]  ;;  %v159_v28 = vld [vmem:[%s3385_s2 + $0x70] sm:$0xff] }
  0x28   :  { %v2476_v27 = vld [vmem:[#allocation3 + $0x10] sm:$0xff]  ;;  %v2477_v29 = vld [vmem:[#allocation3 + $0x18] sm:$0xff]  ;;  %v2478_v30 = vld [vmem:[#allocation3 + $0x20] sm:$0xff] }
  0x29   :  { %168 = vperm.xlu0 %2542, %v146_v7   ;;  %v2497_v31 = vld [vmem:[%s3388_s5 + $0x38] sm:$0xff]  ;;  %v2479_v32 = vld [vmem:[#allocation3 + $0x28] sm:$0xff]  ;;  %v2494_v35 = vld [vmem:[%s3388_s5 + $0x20] sm:$0xff] }
  0x2a   :  { %387 = vmatpush.bf16.msra.mxu0 %v2487_v6  ;;  %178 = vperm.xlu1 %2543, %v148_v8   ;;  %v2496_v33 = vld [vmem:[%s3388_s5 + $0x30] sm:$0xff]  ;;  %v2495_v34 = vld [vmem:[%s3388_s5 + $0x28] sm:$0xff]  ;;  %v2493_v36 = vld [vmem:[%s3388_s5 + $0x18] sm:$0xff] }
  0x2b   :  { %542 = vmatpush.bf16.msra.mxu1 %v2497_v31  ;;  %v2480_v37 = vld [vmem:[#allocation3 + $0x30] sm:$0xff]  ;;  %v2491_v39 = vld [vmem:[%s3388_s5 + $0x8] sm:$0xff]  ;;  %v2490_v40 = vld [vmem:[%s3388_s5] sm:$0xff] }
  0x2c   :  { %v2492_v38 = vld [vmem:[%s3388_s5 + $0x10] sm:$0xff]  ;;  %v2481_v41 = vld [vmem:[#allocation3 + $0x38] sm:$0xff] }
  0x2d   :  { %v2999_v44 = vld [vmem:[%s3387_s4] ss:$0 sm:$0xff] }
  0x2e   :  { %388 = vmatpush.bf16.msra.mxu0 %v2486_v9 }
  0x2f   :  { %188 = vperm.xlu2 %2544, %v150_v23   ;;  %543 = vmatpush.bf16.msra.mxu1 %v2496_v33 }
  0x31   :  { %193 = vperm.xlu0 %2542, %v151_v11  }
  0x32   :  { %389 = vmatpush.bf16.msra.mxu0 %v2485_v10  ;;  %198 = vperm.xlu1 %2543, %v152_v12  }
  0x33   :  { %544 = vmatpush.bf16.msra.mxu1 %v2495_v34 }
  0x36   :  { %390 = vmatpush.bf16.msra.mxu0 %v2484_v13 }
  0x37   :  { %203 = vperm.xlu2 %2544, %v153_v25   ;;  %545 = vmatpush.bf16.msra.mxu1 %v2494_v35 }
  0x39   :  { %208 = vperm.xlu0 %2542, %v154_v15  }
  0x3a   :  { %391 = vmatpush.bf16.msra.mxu0 %v2483_v14  ;;  %213 = vperm.xlu1 %2543, %v155_v16  }
  0x3b   :  { %546 = vmatpush.bf16.msra.mxu1 %v2493_v36 }
  0x3e   :  { %392 = vmatpush.bf16.msra.mxu0 %v2482_v17 }
  0x3f   :  { %218 = vperm.xlu2 %2544, %v156_v26   ;;  %547 = vmatpush.bf16.msra.mxu1 %v2492_v38 }
  0x41   :  { %393 = vmatmul.bf16.vlgmr.msra.gmra.mxu0 %v2474_v18  ;;  %223 = vperm.xlu0 %2542, %v157_v19  }
  0x42   :  { %228 = vperm.xlu1 %2543, %v158_v20  }
  0x43   :  { %548 = vmatpush.bf16.msra.mxu1 %v2491_v39 }
  0x47   :  { %233 = vperm.xlu2 %2544, %v159_v28   ;;  %549 = vmatpush.bf16.msra.mxu1 %v2490_v40 }
  0x49   :  { %238 = vperm.xlu0 %2542, %v160_v22  }
  0x51   :  { %398 = vmatmul.bf16.gmra.mxu0 %v2475_v24 }
  0x61   :  { %403 = vmatmul.bf16.gmra.mxu0 %v2476_v27 }
  0x71   :  { %408 = vmatmul.bf16.gmra.mxu0 %v2477_v29 }
  0x81   :  { %413 = vmatmul.bf16.gmra.mxu0 %v2478_v30  ;;  %v3027_v61 = vpop.permute.xlu2 %183 }
  0x89   :  { %v3031_v2 = vpop.permute.xlu2 %188 }
  0x91   :  { %418 = vmatmul.bf16.gmra.mxu0 %v2479_v32  ;;  %v3059_v20 = vpop.permute.xlu2 %203 }
  0x93   :  { %v2994_v42 = vpop.permute.xlu0 %163 }
  0x94   :  { %v3013_v52 = vpop.permute.xlu1 %173 }
  0x99   :  { %v3073_v29 = vpop.permute.xlu2 %218 }
  0x9b   :  { %v3003_v48 = vpop.permute.xlu0 %168 }
  0x9c   :  { %v3017_v57 = vpop.permute.xlu1 %178 }
  0xa1   :  { %423 = vmatmul.bf16.gmra.mxu0 %v2480_v37 }
  0xa3   :  { %v3043_v10 = vpop.permute.xlu0 %193 }
  0xa4   :  { %v3045_v11 = vpop.permute.xlu1 %198 }
  0xab   :  { %v3057_v19 = vpop.permute.xlu0 %208 }
  0xac   :  { %v3071_v28 = vpop.permute.xlu1 %213 }
  0xb1   :  { %428 = vmatmul.bf16.gmra.mxu0 %v2481_v41 }
  0xb3   :  { %v3085_v37 = vpop.permute.xlu0 %223 }
  0xb4   :  { %v3087_v38 = vpop.permute.xlu1 %228 }
  0xbe   :  { %v394_v43 = vpop.f32.mrf.mxu0 }
  0xbf   :  { %v438_v45 = vadd.f32 %v2999_v44, %v394_v43 }
  0xc1   :  { %v3006_v49 = vmul.f32 %v438_v45, %v2994_v42 }
  0xc6   :  { %v396_v46 = vpop.f32.mrf.mxu0 }
  0xc7   :  { %v439_v47 = vadd.f32 %v2999_v44, %v396_v46 }
  0xc9   :  { %v3009_v50 = vmul.f32 %v439_v47, %v3003_v48 }
  0xcb   :  { %v470_v51 = vpack.c.bf16 %v3009_v50, %v3006_v49 }
  0xcd   :  { %550 = vmatmul.bf16.vlgmr.msra.gmra.mxu1 %v470_v51  ;;  %v3099_v51 = vpop.permute.xlu0 %238 }
  0xce   :  { %v399_v53 = vpop.f32.mrf.mxu0 }
  0xcf   :  { %v440_v54 = vadd.f32 %v2999_v44, %v399_v53  ;;  %v3101_v53 = vpop.permute.xlu2 %233 }
  0xd1   :  { %v3020_v58 = vmul.f32 %v440_v54, %v3013_v52 }
  0xd6   :  { %v401_v55 = vpop.f32.mrf.mxu0 }
  0xd7   :  { %v441_v56 = vadd.f32 %v2999_v44, %v401_v55 }
  0xd9   :  { %v3023_v59 = vmul.f32 %v441_v56, %v3017_v57 }
  0xdb   :  { %v471_v60 = vpack.c.bf16 %v3023_v59, %v3020_v58 }
  0xdd   :  { %555 = vmatmul.bf16.gmra.mxu1 %v471_v60 }
  0xde   :  { %v404_v62 = vpop.f32.mrf.mxu0 }
  0xdf   :  { %v442_v63 = vadd.f32 %v2999_v44, %v404_v62 }
  0xe1   :  { %v3034_v3 = vmul.f32 %v442_v63, %v3027_v61 }
  0xe6   :  { %v406_v0 = vpop.f32.mrf.mxu0 }
  0xe7   :  { %v443_v1 = vadd.f32 %v2999_v44, %v406_v0 }
  0xe9   :  { %v3037_v4 = vmul.f32 %v443_v1, %v3031_v2 }
  0xeb   :  { %v472_v5 = vpack.c.bf16 %v3037_v4, %v3034_v3 }
  0xed   :  { %560 = vmatmul.bf16.gmra.mxu1 %v472_v5 }
  0xee   :  { %v409_v6 = vpop.f32.mrf.mxu0 }
  0xef   :  { %v444_v7 = vadd.f32 %v2999_v44, %v409_v6  ;;  %v3111_v6 = vld [vmem:[#allocation6] sm:$0xff] }
  0xf1   :  { %v3048_v12 = vmul.f32 %v444_v7, %v3043_v10 }
  0xf6   :  { %v411_v8 = vpop.f32.mrf.mxu0 }
  0xf7   :  { %v445_v9 = vadd.f32 %v2999_v44, %v411_v8 }
  0xf9   :  { %v3051_v13 = vmul.f32 %v445_v9, %v3045_v11 }
  0xfb   :  { %v473_v14 = vpack.c.bf16 %v3051_v13, %v3048_v12 }
  0xfd   :  { %565 = vmatmul.bf16.gmra.mxu1 %v473_v14 }
  0xfe   :  { %v414_v15 = vpop.f32.mrf.mxu0 }
  0xff   :  { %v446_v16 = vadd.f32 %v2999_v44, %v414_v15 }
 0x101   :  { %v3062_v21 = vmul.f32 %v446_v16, %v3059_v20 }
 0x106   :  { %v416_v17 = vpop.f32.mrf.mxu0 }
 0x107   :  { %v447_v18 = vadd.f32 %v2999_v44, %v416_v17 }
 0x109   :  { %v3065_v22 = vmul.f32 %v447_v18, %v3057_v19  ;;  %v3115_v18 = vld [vmem:[#allocation6 + $0x8] sm:$0xff] }
 0x10b   :  { %v474_v23 = vpack.c.bf16 %v3065_v22, %v3062_v21 }
 0x10d   :  { %570 = vmatmul.bf16.gmra.mxu1 %v474_v23 }
 0x10e   :  { %v419_v24 = vpop.f32.mrf.mxu0 }
 0x10f   :  { %v448_v25 = vadd.f32 %v2999_v44, %v419_v24 }
 0x111   :  { %v3076_v30 = vmul.f32 %v448_v25, %v3071_v28 }
 0x116   :  { %v421_v26 = vpop.f32.mrf.mxu0 }
 0x117   :  { %v449_v27 = vadd.f32 %v2999_v44, %v421_v26 }
 0x119   :  { %v3079_v31 = vmul.f32 %v449_v27, %v3073_v29 }
 0x11b   :  { %v475_v32 = vpack.c.bf16 %v3079_v31, %v3076_v30 }
 0x11d   :  { %575 = vmatmul.bf16.gmra.mxu1 %v475_v32 }
 0x11e   :  { %v424_v33 = vpop.f32.mrf.mxu0 }
 0x11f   :  { %v450_v34 = vadd.f32 %v2999_v44, %v424_v33 }
 0x121   :  { %v3090_v39 = vmul.f32 %v450_v34, %v3085_v37  ;;  %v3119_v34 = vld [vmem:[#allocation6 + $0x10] sm:$0xff] }
 0x126   :  { %v426_v35 = vpop.f32.mrf.mxu0 }
 0x127   :  { %v451_v36 = vadd.f32 %v2999_v44, %v426_v35 }
 0x129   :  { %v3093_v40 = vmul.f32 %v451_v36, %v3087_v38 }
 0x12b   :  { %v476_v41 = vpack.c.bf16 %v3093_v40, %v3090_v39 }
 0x12d   :  { %580 = vmatmul.bf16.gmra.mxu1 %v476_v41 }
 0x12e   :  { %v429_v43 = vpop.f32.mrf.mxu0 }
 0x12f   :  { %v452_v45 = vadd.f32 %v2999_v44, %v429_v43 }
 0x131   :  { %v3104_v54 = vmul.f32 %v452_v45, %v3101_v53 }
 0x136   :  { %v431_v46 = vpop.f32.mrf.mxu0 }
 0x137   :  { %v453_v47 = vadd.f32 %v2999_v44, %v431_v46 }
 0x139   :  { %v3107_v55 = vmul.f32 %v453_v47, %v3099_v51 }
 0x13b   :  { %v477_v56 = vpack.c.bf16 %v3107_v55, %v3104_v54 }
 0x13d   :  { %585 = vmatmul.bf16.gmra.mxu1 %v477_v56  ;;  %v3123_v56 = vld [vmem:[#allocation6 + $0x18] sm:$0xff] }
 0x14a   :  { %v551_v60 = vpop.f32.mrf.mxu1 }
 0x14b   :  { %v591_v62 = vpack.c.bf16 %v551_v60, %v551_v60 }
 0x14d   :  { %v614_v44 = vunpack.c.l.b16 %v591_v62 }
 0x152   :  { %v553_v63 = vpop.f32.mrf.mxu1 }
 0x153   :  { %v592_v0 = vpack.c.bf16 %v553_v63, %v553_v63 }
 0x155   :  { %v615_v1 = vunpack.c.l.b16 %v592_v0 }
 0x157   :  { %v616_v5 = vpack.c.b16 %v615_v1, %v614_v44 }
 0x159   :  { %629 = vmatpush.bf16.msra.mxu2 %v616_v5 }
 0x15a   :  { %v556_v7 = vpop.f32.mrf.mxu1 }
 0x15b   :  { %v593_v8 = vpack.c.bf16 %v556_v7, %v556_v7  ;;  %v3127_v7 = vld [vmem:[#allocation6 + $0x20] sm:$0xff] }
 0x15c   :  { %2293 = vmatmul.msk.bf16.vlgmr.msra.gmra.mxu2 %vm618_vm0, %v3111_v6 }
 0x15d   :  { %v643_v15 = vunpack.c.l.b16 %v593_v8 }
 0x162   :  { %v558_v9 = vpop.f32.mrf.mxu1 }
 0x163   :  { %v594_v14 = vpack.c.bf16 %v558_v9, %v558_v9 }
 0x165   :  { %v644_v16 = vunpack.c.l.b16 %v594_v14 }
 0x167   :  { %v645_v17 = vpack.c.b16 %v644_v16, %v643_v15 }
 0x169   :  { %657 = vmatpush.bf16.msrb.mxu2 %v645_v17 }
 0x16a   :  { %v561_v23 = vpop.f32.mrf.mxu1 }
 0x16b   :  { %v595_v24 = vpack.c.bf16 %v561_v23, %v561_v23 }
 0x16c   :  { %2298 = vmatmul.msk.bf16.vlgmr.msrb.gmra.mxu2 %vm618_vm0, %v3115_v18 }
 0x16d   :  { %v671_v27 = vunpack.c.l.b16 %v595_v24  ;;  %v3131_v24 = vld [vmem:[#allocation6 + $0x28] sm:$0xff] }
 0x172   :  { %v563_v25 = vpop.f32.mrf.mxu1 }
 0x173   :  { %v596_v26 = vpack.c.bf16 %v563_v25, %v563_v25 }
 0x175   :  { %v672_v32 = vunpack.c.l.b16 %v596_v26 }
 0x177   :  { %v673_v33 = vpack.c.b16 %v672_v32, %v671_v27 }
 0x179   :  { %685 = vmatpush.bf16.msra.mxu2 %v673_v33 }
 0x17a   :  { %v566_v35 = vpop.f32.mrf.mxu1 }
 0x17b   :  { %v597_v36 = vpack.c.bf16 %v566_v35, %v566_v35 }
 0x17c   :  { %2303 = vmatmul.msk.bf16.vlgmr.msra.gmra.mxu2 %vm618_vm0, %v3119_v34 }
 0x17d   :  { %v699_v45 = vunpack.c.l.b16 %v597_v36  ;;  %v2505_v36 = vld [vmem:[%s3388_s5 + $0x78] sm:$0xff] }
 0x182   :  { %v568_v41 = vpop.f32.mrf.mxu1 }
 0x183   :  { %v598_v43 = vpack.c.bf16 %v568_v41, %v568_v41 }
 0x185   :  { %v700_v46 = vunpack.c.l.b16 %v598_v43  ;;  %v3138_v43 = vld [vmem:[#allocation6 + $0x30] sm:$0xff] }
 0x187   :  { %v701_v47 = vpack.c.b16 %v700_v46, %v699_v45  ;;  %v2504_v46 = vld [vmem:[%s3388_s5 + $0x70] sm:$0xff] }
 0x189   :  { %713 = vmatpush.bf16.msra.mxu3 %v701_v47  ;;  %v2503_v47 = vld [vmem:[%s3388_s5 + $0x68] sm:$0xff] }
 0x18a   :  { %v571_v60 = vpop.f32.mrf.mxu1 }
 0x18b   :  { %v599_v62 = vpack.c.bf16 %v571_v60, %v571_v60 }
 0x18c   :  { %2308 = vmatmul.msk.bf16.vlgmr.msra.gmra.mxu3 %vm618_vm0, %v3123_v56 }
 0x18d   :  { %v727_v1 = vunpack.c.l.b16 %v599_v62 }
 0x192   :  { %v573_v63 = vpop.f32.mrf.mxu1 }
 0x193   :  { %v600_v0 = vpack.c.bf16 %v573_v63, %v573_v63  ;;  %v2502_v63 = vld [vmem:[%s3388_s5 + $0x60] sm:$0xff] }
 0x195   :  { %v728_v44 = vunpack.c.l.b16 %v600_v0 }
 0x197   :  { %v729_v5 = vpack.c.b16 %v728_v44, %v727_v1 }
 0x199   :  { %741 = vmatpush.bf16.msrb.mxu2 %v729_v5  ;;  %v2501_v5 = vld [vmem:[%s3388_s5 + $0x58] sm:$0xff] }
 0x19a   :  { %v576_v8 = vpop.f32.mrf.mxu1 }
 0x19b   :  { %v601_v9 = vpack.c.bf16 %v576_v8, %v576_v8 }
 0x19c   :  { %2313 = vmatmul.msk.bf16.vlgmr.msrb.gmra.mxu2 %vm618_vm0, %v3127_v7 }
 0x19d   :  { %v755_v16 = vunpack.c.l.b16 %v601_v9  ;;  %v3154_v9 = vld [vmem:[#allocation6 + $0x38] sm:$0xff] }
 0x1a2   :  { %v578_v14 = vpop.f32.mrf.mxu1 }
 0x1a3   :  { %v602_v15 = vpack.c.bf16 %v578_v14, %v578_v14  ;;  %v2500_v14 = vld [vmem:[%s3388_s5 + $0x50] sm:$0xff] }
 0x1a5   :  { %v756_v17 = vunpack.c.l.b16 %v602_v15  ;;  %v2499_v15 = vld [vmem:[%s3388_s5 + $0x48] sm:$0xff] }
 0x1a7   :  { %v757_v23 = vpack.c.b16 %v756_v17, %v755_v16  ;;  %v2498_v16 = vld [vmem:[%s3388_s5 + $0x40] sm:$0xff] }
 0x1a9   :  { %769 = vmatpush.bf16.msrb.mxu3 %v757_v23 }
 0x1aa   :  { %v581_v25 = vpop.f32.mrf.mxu1 }
 0x1ab   :  { %v603_v26 = vpack.c.bf16 %v581_v25, %v581_v25 }
 0x1ac   :  { %2318 = vmatmul.msk.bf16.vlgmr.msrb.gmra.mxu3 %vm618_vm0, %v3131_v24 }
 0x1ad   :  { %v783_v33 = vunpack.c.l.b16 %v603_v26 }
 0x1b2   :  { %v583_v27 = vpop.f32.mrf.mxu1 }
 0x1b3   :  { %v604_v32 = vpack.c.bf16 %v583_v27, %v583_v27 }
 0x1b5   :  { %v784_v35 = vunpack.c.l.b16 %v604_v32 }
 0x1b7   :  { %v785_v41 = vpack.c.b16 %v784_v35, %v783_v33 }
 0x1b9   :  { %797 = vmatpush.bf16.msra.mxu2 %v785_v41 }
 0x1ba   :  { %v586_v45 = vpop.f32.mrf.mxu1 }
 0x1bb   :  { %v605_v60 = vpack.c.bf16 %v586_v45, %v586_v45 }
 0x1bc   :  { %2323 = vmatmul.msk.bf16.vlgmr.msra.gmra.mxu2 %vm618_vm0, %v3138_v43 }
 0x1bd   :  { %953 = vmatpush.bf16.msrb.mxu2 %v2505_v36  ;;  %v811_v1 = vunpack.c.l.b16 %v605_v60 }
 0x1c1   :  { %954 = vmatpush.bf16.msrb.mxu2 %v2504_v46 }
 0x1c2   :  { %v588_v62 = vpop.f32.mrf.mxu1 }
 0x1c3   :  { %v606_v0 = vpack.c.bf16 %v588_v62, %v588_v62 }
 0x1c5   :  { %955 = vmatpush.bf16.msrb.mxu2 %v2503_v47  ;;  %v812_v44 = vunpack.c.l.b16 %v606_v0 }
 0x1c7   :  { %v813_v8 = vpack.c.b16 %v812_v44, %v811_v1 }
 0x1c9   :  { %956 = vmatpush.bf16.msrb.mxu2 %v2502_v63  ;;  %825 = vmatpush.bf16.msra.mxu3 %v813_v8 }
 0x1cc   :  { %2328 = vmatmul.msk.bf16.vlgmr.msra.gmra.mxu3 %vm618_vm0, %v3154_v9 }
 0x1cd   :  { %957 = vmatpush.bf16.msrb.mxu2 %v2501_v5 }
 0x1d1   :  { %958 = vmatpush.bf16.msrb.mxu2 %v2500_v14 }
 0x1d5   :  { %959 = vmatpush.bf16.msrb.mxu2 %v2499_v15 }
 0x1d9   :  { %960 = vmatpush.bf16.msrb.mxu2 %v2498_v16 }
 0x1df   :  { %v631_v17 = vpop.f32.mrf.mxu2 }
 0x1e0   :  { %v832_v23 = vmax.f32 %v631_v17, 0.0 }
 0x1e2   :  { %v848_v26 = vmul.f32 %v832_v23, %v2994_v42 }
 0x1e4   :  { %v3170_v33 = vadd.f32 %v848_v26, %v3006_v49 }
 0x1e7   :  { %v633_v25 = vpop.f32.mrf.mxu2 }
 0x1e8   :  { %v833_v27 = vmax.f32 %v633_v25, 0.0 }
 0x1ea   :  { %v849_v32 = vmul.f32 %v833_v27, %v3003_v48 }
 0x1ec   :  { %v3173_v35 = vadd.f32 %v849_v32, %v3009_v50 }
 0x1ee   :  { %v880_v36 = vpack.c.bf16 %v3173_v35, %v3170_v33 }
 0x1ef   :  { %v659_v41 = vpop.f32.mrf.mxu2 }
 0x1f0   :  { %961 = vmatmul.bf16.vlgmr.msrb.gmra.mxu2 %v880_v36  ;;  %v834_v45 = vmax.f32 %v659_v41, 0.0 }
 0x1f2   :  { %v850_v47 = vmul.f32 %v834_v45, %v3013_v52 }
 0x1f4   :  { %v3180_v63 = vadd.f32 %v850_v47, %v3020_v58 }
 0x1f7   :  { %v661_v46 = vpop.f32.mrf.mxu2 }
 0x1f8   :  { %v835_v60 = vmax.f32 %v661_v46, 0.0 }
 0x1fa   :  { %v851_v62 = vmul.f32 %v835_v60, %v3017_v57 }
 0x1fc   :  { %v3183_v49 = vadd.f32 %v851_v62, %v3023_v59 }
 0x1fe   :  { %v881_v50 = vpack.c.bf16 %v3183_v49, %v3180_v63 }
 0x1ff   :  { %v687_v0 = vpop.f32.mrf.mxu2 }
 0x200   :  { %966 = vmatmul.bf16.gmra.mxu2 %v881_v50  ;;  %v836_v1 = vmax.f32 %v687_v0, 0.0 }
 0x202   :  { %v852_v5 = vmul.f32 %v836_v1, %v3027_v61 }
 0x204   :  { %v3190_v15 = vadd.f32 %v852_v5, %v3034_v3 }
 0x207   :  { %v689_v44 = vpop.f32.mrf.mxu2 }
 0x208   :  { %v837_v8 = vmax.f32 %v689_v44, 0.0 }
 0x20a   :  { %v853_v14 = vmul.f32 %v837_v8, %v3031_v2 }
 0x20c   :  { %v3193_v58 = vadd.f32 %v853_v14, %v3037_v4 }
 0x20e   :  { %v882_v59 = vpack.c.bf16 %v3193_v58, %v3190_v15 }
 0x20f   :  { %v715_v16 = vpop.f32.mrf.mxu3 }
 0x210   :  { %971 = vmatmul.bf16.gmra.mxu2 %v882_v59  ;;  %v838_v17 = vmax.f32 %v715_v16, 0.0 }
 0x212   :  { %v854_v25 = vmul.f32 %v838_v17, %v3043_v10 }
 0x214   :  { %v3200_v32 = vadd.f32 %v854_v25, %v3048_v12 }
 0x217   :  { %v717_v23 = vpop.f32.mrf.mxu3 }
 0x218   :  { %v839_v26 = vmax.f32 %v717_v23, 0.0 }
 0x21a   :  { %v855_v27 = vmul.f32 %v839_v26, %v3045_v11 }
 0x21c   :  { %v3203_v3 = vadd.f32 %v855_v27, %v3051_v13 }
 0x21e   :  { %v883_v4 = vpack.c.bf16 %v3203_v3, %v3200_v32 }
 0x21f   :  { %v743_v36 = vpop.f32.mrf.mxu2 }
 0x220   :  { %976 = vmatmul.bf16.gmra.mxu2 %v883_v4  ;;  %v840_v41 = vmax.f32 %v743_v36, 0.0 }
 0x222   :  { %v856_v46 = vmul.f32 %v840_v41, %v3059_v20 }
 0x224   :  { %v3210_v62 = vadd.f32 %v856_v46, %v3062_v21 }
 0x227   :  { %v745_v45 = vpop.f32.mrf.mxu2 }
 0x228   :  { %v841_v47 = vmax.f32 %v745_v45, 0.0 }
 0x22a   :  { %v857_v60 = vmul.f32 %v841_v47, %v3057_v19 }
 0x22c   :  { %v3213_v12 = vadd.f32 %v857_v60, %v3065_v22 }
 0x22e   :  { %v884_v13 = vpack.c.bf16 %v3213_v12, %v3210_v62 }
 0x22f   :  { %v771_v50 = vpop.f32.mrf.mxu3 }
 0x230   :  { %981 = vmatmul.bf16.gmra.mxu2 %v884_v13  ;;  %v842_v0 = vmax.f32 %v771_v50, 0.0 }
 0x232   :  { %v858_v44 = vmul.f32 %v842_v0, %v3071_v28 }
 0x234   :  { %v3220_v14 = vadd.f32 %v858_v44, %v3076_v30 }
 0x237   :  { %v773_v1 = vpop.f32.mrf.mxu3 }
 0x238   :  { %v843_v5 = vmax.f32 %v773_v1, 0.0 }
 0x23a   :  { %v859_v8 = vmul.f32 %v843_v5, %v3073_v29 }
 0x23c   :  { %v3223_v21 = vadd.f32 %v859_v8, %v3079_v31 }
 0x23e   :  { %v885_v22 = vpack.c.bf16 %v3223_v21, %v3220_v14 }
 0x23f   :  { %v799_v59 = vpop.f32.mrf.mxu2 }
 0x240   :  { %986 = vmatmul.bf16.gmra.mxu2 %v885_v22  ;;  %v844_v16 = vmax.f32 %v799_v59, 0.0 }
 0x242   :  { %v860_v23 = vmul.f32 %v844_v16, %v3085_v37 }
 0x244   :  { %v3230_v27 = vadd.f32 %v860_v23, %v3090_v39 }
 0x247   :  { %v801_v17 = vpop.f32.mrf.mxu2 }
 0x248   :  { %v845_v25 = vmax.f32 %v801_v17, 0.0 }
 0x24a   :  { %v861_v26 = vmul.f32 %v845_v25, %v3087_v38 }
 0x24c   :  { %v3233_v30 = vadd.f32 %v861_v26, %v3093_v40 }
 0x24e   :  { %v886_v31 = vpack.c.bf16 %v3233_v30, %v3230_v27 }
 0x24f   :  { %v827_v4 = vpop.f32.mrf.mxu3 }
 0x250   :  { %991 = vmatmul.bf16.gmra.mxu2 %v886_v31  ;;  %v846_v36 = vmax.f32 %v827_v4, 0.0 }
 0x252   :  { %v862_v45 = vmul.f32 %v846_v36, %v3101_v53 }
 0x254   :  { %v3240_v60 = vadd.f32 %v862_v45, %v3104_v54 }
 0x257   :  { %v829_v41 = vpop.f32.mrf.mxu3 }
 0x258   :  { %v847_v46 = vmax.f32 %v829_v41, 0.0 }
 0x25a   :  { %v863_v47 = vmul.f32 %v847_v46, %v3099_v51 }
 0x25c   :  { %v3243_v39 = vadd.f32 %v863_v47, %v3107_v55 }
 0x25e   :  { %v887_v40 = vpack.c.bf16 %v3243_v39, %v3240_v60 }
 0x260   :  { %996 = vmatmul.bf16.gmra.mxu2 %v887_v40 }
 0x273   :  { %v962_v13 = vpop.f32.mrf.mxu2 }
 0x274   :  { %v1002_v50 = vpack.c.bf16 %v962_v13, %v962_v13 }
 0x276   :  { %v1020_v44 = vunpack.c.l.b16 %v1002_v50 }
 0x27b   :  { %v964_v0 = vpop.f32.mrf.mxu2 }
 0x27c   :  { %v1003_v1 = vpack.c.bf16 %v964_v0, %v964_v0 }
 0x27e   :  { %v1021_v5 = vunpack.c.l.b16 %v1003_v1 }
 0x280   :  { %v1022_v8 = vpack.c.b16 %v1021_v5, %v1020_v44 }
 0x282   :  { %1031 = vmatpush.bf16.msrb.mxu3 %v1022_v8 }
 0x283   :  { %v967_v22 = vpop.f32.mrf.mxu2 }
 0x284   :  { %v1004_v54 = vpack.c.bf16 %v967_v22, %v967_v22 }
 0x285   :  { %2377 = vmatmul.msk.bf16.vlgmr.msrb.gmra.mxu3 %vm618_vm0, %v3111_v6 }
 0x286   :  { %v1040_v16 = vunpack.c.l.b16 %v1004_v54 }
 0x28b   :  { %v969_v59 = vpop.f32.mrf.mxu2 }
 0x28c   :  { %v1005_v55 = vpack.c.bf16 %v969_v59, %v969_v59 }
 0x28e   :  { %v1041_v17 = vunpack.c.l.b16 %v1005_v55 }
 0x290   :  { %v1042_v23 = vpack.c.b16 %v1041_v17, %v1040_v16 }
 0x292   :  { %1051 = vmatpush.bf16.msra.mxu3 %v1042_v23 }
 0x293   :  { %v972_v25 = vpop.f32.mrf.mxu2 }
 0x294   :  { %v1006_v26 = vpack.c.bf16 %v972_v25, %v972_v25 }
 0x295   :  { %2378 = vmatmul.msk.bf16.vlgmr.msra.gmra.mxu3 %vm618_vm0, %v3115_v18 }
 0x296   :  { %v1060_v36 = vunpack.c.l.b16 %v1006_v26 }
 0x29b   :  { %v974_v31 = vpop.f32.mrf.mxu2 }
 0x29c   :  { %v1007_v4 = vpack.c.bf16 %v974_v31, %v974_v31  ;;  %v2512_v31 = vld [vmem:[#allocation9 + $0x30] sm:$0xff] }
 0x29e   :  { %v1061_v41 = vunpack.c.l.b16 %v1007_v4 }
 0x2a0   :  { %v1062_v45 = vpack.c.b16 %v1061_v41, %v1060_v36  ;;  %v2511_v41 = vld [vmem:[#allocation9 + $0x28] sm:$0xff] }
 0x2a2   :  { %1071 = vmatpush.bf16.msrb.mxu3 %v1062_v45 }
 0x2a3   :  { %v977_v46 = vpop.f32.mrf.mxu2 }
 0x2a4   :  { %v1008_v6 = vpack.c.bf16 %v977_v46, %v977_v46 }
 0x2a5   :  { %2379 = vmatmul.msk.bf16.vlgmr.msrb.gmra.mxu3 %vm618_vm0, %v3119_v34 }
 0x2a6   :  { %v1080_v13 = vunpack.c.l.b16 %v1008_v6  ;;  %v2510_v6 = vld [vmem:[#allocation9 + $0x20] sm:$0xff] }
 0x2ab   :  { %v979_v47 = vpop.f32.mrf.mxu2 }
 0x2ac   :  { %v1009_v40 = vpack.c.bf16 %v979_v47, %v979_v47 }
 0x2ae   :  { %v1081_v50 = vunpack.c.l.b16 %v1009_v40 }
 0x2b0   :  { %v1082_v0 = vpack.c.b16 %v1081_v50, %v1080_v13 }
 0x2b2   :  { %1091 = vmatpush.bf16.msra.mxu3 %v1082_v0  ;;  %v2508_v0 = vld [vmem:[#allocation9 + $0x10] sm:$0xff] }
 0x2b3   :  { %v982_v1 = vpop.f32.mrf.mxu2 }
 0x2b4   :  { %v1010_v18 = vpack.c.bf16 %v982_v1, %v982_v1 }
 0x2b5   :  { %2380 = vmatmul.msk.bf16.vlgmr.msra.gmra.mxu3 %vm618_vm0, %v3123_v56  ;;  %v2513_v56 = vld [vmem:[#allocation9 + $0x38] sm:$0xff] }
 0x2b6   :  { %v1100_v8 = vunpack.c.l.b16 %v1010_v18  ;;  %1674 = vmatpush.bf16.msrb.mxu1 %v2513_v56 }
 0x2ba   :  { %1675 = vmatpush.bf16.msrb.mxu1 %v2512_v31 }
 0x2bb   :  { %v984_v44 = vpop.f32.mrf.mxu2 }
 0x2bc   :  { %v1011_v5 = vpack.c.bf16 %v984_v44, %v984_v44 }
 0x2be   :  { %v1101_v22 = vunpack.c.l.b16 %v1011_v5  ;;  %1676 = vmatpush.bf16.msrb.mxu1 %v2511_v41 }
 0x2c0   :  { %v1102_v54 = vpack.c.b16 %v1101_v22, %v1100_v8  ;;  %v2507_v8 = vld [vmem:[#allocation9 + $0x8] sm:$0xff]  ;;  %v2506_v22 = vld [vmem:[#allocation9] sm:$0xff] }
 0x2c2   :  { %1111 = vmatpush.bf16.msrb.mxu3 %v1102_v54  ;;  %1677 = vmatpush.bf16.msrb.mxu1 %v2510_v6 }
 0x2c3   :  { %v987_v59 = vpop.f32.mrf.mxu2 }
 0x2c4   :  { %v1012_v34 = vpack.c.bf16 %v987_v59, %v987_v59 }
 0x2c5   :  { %2381 = vmatmul.msk.bf16.vlgmr.msrb.gmra.mxu3 %vm618_vm0, %v3127_v7 }
 0x2c6   :  { %v1120_v17 = vunpack.c.l.b16 %v1012_v34  ;;  %v3267_v34 = vld [vmem:[%s3389_s6] ss:$0 sm:$0xff] }
 0x2cb   :  { %v989_v55 = vpop.f32.mrf.mxu2 }
 0x2cc   :  { %v1013_v16 = vpack.c.bf16 %v989_v55, %v989_v55 }
 0x2ce   :  { %v1121_v23 = vunpack.c.l.b16 %v1013_v16 }
 0x2d0   :  { %v1122_v25 = vpack.c.b16 %v1121_v23, %v1120_v17 }
 0x2d2   :  { %1131 = vmatpush.bf16.msra.mxu3 %v1122_v25 }
 0x2d3   :  { %v992_v26 = vpop.f32.mrf.mxu2 }
 0x2d4   :  { %v1014_v4 = vpack.c.bf16 %v992_v26, %v992_v26 }
 0x2d5   :  { %2382 = vmatmul.msk.bf16.vlgmr.msra.gmra.mxu3 %vm618_vm0, %v3131_v24  ;;  %v2509_v24 = vld [vmem:[#allocation9 + $0x18] sm:$0xff] }
 0x2d6   :  { %2522 = vmatpush.bf16.msrb.mxu3 %v2513_v56  ;;  %v1140_v45 = vunpack.c.l.b16 %v1014_v4  ;;  %1678 = vmatpush.bf16.msrb.mxu1 %v2509_v24 }
 0x2da   :  { %2523 = vmatpush.bf16.msrb.mxu3 %v2512_v31  ;;  %1679 = vmatpush.bf16.msrb.mxu1 %v2508_v0 }
 0x2db   :  { %v994_v36 = vpop.f32.mrf.mxu2 }
 0x2dc   :  { %v1015_v7 = vpack.c.bf16 %v994_v36, %v994_v36 }
 0x2de   :  { %v1141_v46 = vunpack.c.l.b16 %v1015_v7  ;;  %2524 = vmatpush.bf16.msrb.mxu3 %v2511_v41  ;;  %1680 = vmatpush.bf16.msrb.mxu1 %v2507_v8 }
 0x2e0   :  { %v1142_v47 = vpack.c.b16 %v1141_v46, %v1140_v45 }
 0x2e2   :  { %1151 = vmatpush.bf16.msrb.mxu0 %v1142_v47  ;;  %2525 = vmatpush.bf16.msrb.mxu3 %v2510_v6 }
 0x2e3   :  { %v997_v40 = vpop.f32.mrf.mxu2  ;;  %1681 = vmatpush.bf16.msrb.mxu1 %v2506_v22 }
 0x2e4   :  { %v1016_v13 = vpack.c.bf16 %v997_v40, %v997_v40 }
 0x2e5   :  { %2383 = vmatmul.msk.bf16.vlgmr.msrb.gmra.mxu0 %vm618_vm0, %v3138_v43 }
 0x2e6   :  { %2526 = vmatpush.bf16.msrb.mxu3 %v2509_v24  ;;  %v1160_v18 = vunpack.c.l.b16 %v1016_v13 }
 0x2ea   :  { %2527 = vmatpush.bf16.msrb.mxu3 %v2508_v0 }
 0x2eb   :  { %v999_v50 = vpop.f32.mrf.mxu2 }
 0x2ec   :  { %v1017_v1 = vpack.c.bf16 %v999_v50, %v999_v50 }
 0x2ee   :  { %v1161_v44 = vunpack.c.l.b16 %v1017_v1  ;;  %2528 = vmatpush.bf16.msrb.mxu3 %v2507_v8 }
 0x2f0   :  { %v1162_v5 = vpack.c.b16 %v1161_v44, %v1160_v18 }
 0x2f2   :  { %1171 = vmatpush.bf16.msra.mxu0 %v1162_v5  ;;  %2529 = vmatpush.bf16.msrb.mxu3 %v2506_v22 }
 0x2f5   :  { %2384 = vmatmul.msk.bf16.vlgmr.msra.gmra.mxu0 %vm618_vm0, %v3154_v9 }
 0x308   :  { %v1033_v43 = vpop.f32.mrf.mxu3 }
 0x309   :  { %v1178_v54 = vmax.f32 %v1033_v43, 0.0 }
 0x30b   :  { %v1194_v59 = vmul.f32 %v1178_v54, %v2994_v42 }
 0x30d   :  { %v1210_v55 = vadd.f32 %v1194_v59, %v3170_v33 }
 0x30f   :  { %v1230_v16 = vmul.f32 %v3267_v34, %v1210_v55 }
 0x310   :  { %v1035_v17 = vpop.f32.mrf.mxu3 }
 0x311   :  { %v1179_v23 = vmax.f32 %v1035_v17, 0.0  ;;  %1246 = vadd.xlane.f32.xlu1 %v1230_v16 }
 0x313   :  { %v1195_v9 = vmul.f32 %v1179_v23, %v3003_v48 }
 0x315   :  { %v1211_v25 = vadd.f32 %v1195_v9, %v3173_v35 }
 0x317   :  { %v1602_v26 = vpack.c.bf16 %v1211_v25, %v1210_v55  ;;  %v1231_v56 = vmul.f32 %v3267_v34, %v1211_v25 }
 0x318   :  { %v1053_v31 = vpop.f32.mrf.mxu3 }
 0x319   :  { %v1180_v4 = vmax.f32 %v1053_v31, 0.0  ;;  %1682 = vmatmul.bf16.vlgmr.msrb.gmra.mxu1 %v1602_v26  ;;  %1248 = vadd.xlane.f32.xlu2 %v1231_v56 }
 0x31b   :  { %v1196_v36 = vmul.f32 %v1180_v4, %v3013_v52 }
 0x31d   :  { %v1212_v33 = vadd.f32 %v1196_v36, %v3180_v63 }
 0x31f   :  { %v1232_v41 = vmul.f32 %v3267_v34, %v1212_v33 }
 0x320   :  { %v1055_v7 = vpop.f32.mrf.mxu3 }
 0x321   :  { %v1181_v45 = vmax.f32 %v1055_v7, 0.0  ;;  %1250 = vadd.xlane.f32.xlu0 %v1232_v41 }
 0x323   :  { %v1197_v46 = vmul.f32 %v1181_v45, %v3017_v57 }
 0x325   :  { %v1213_v35 = vadd.f32 %v1197_v46, %v3183_v49 }
 0x327   :  { %v1603_v6 = vpack.c.bf16 %v1213_v35, %v1212_v33  ;;  %v1233_v47 = vmul.f32 %v3267_v34, %v1213_v35 }
 0x328   :  { %v1073_v40 = vpop.f32.mrf.mxu3 }
 0x329   :  { %v1182_v24 = vmax.f32 %v1073_v40, 0.0  ;;  %1687 = vmatmul.bf16.gmra.mxu1 %v1603_v6  ;;  %1252 = vadd.xlane.f32.xlu2 %v1233_v47 }
 0x32b   :  { %v1198_v13 = vmul.f32 %v1182_v24, %v3027_v61 }
 0x32d   :  { %v1214_v63 = vadd.f32 %v1198_v13, %v3190_v15 }
 0x32f   :  { %v1234_v50 = vmul.f32 %v3267_v34, %v1214_v63 }
 0x330   :  { %v1075_v0 = vpop.f32.mrf.mxu3 }
 0x331   :  { %v1183_v1 = vmax.f32 %v1075_v0, 0.0  ;;  %1254 = vadd.xlane.f32.xlu1 %v1234_v50 }
 0x333   :  { %v1199_v18 = vmul.f32 %v1183_v1, %v3031_v2 }
 0x335   :  { %v1215_v49 = vadd.f32 %v1199_v18, %v3193_v58 }
 0x337   :  { %v1604_v44 = vpack.c.bf16 %v1215_v49, %v1214_v63  ;;  %v1235_v5 = vmul.f32 %v3267_v34, %v1215_v49 }
 0x338   :  { %v1093_v8 = vpop.f32.mrf.mxu3 }
 0x339   :  { %v1184_v22 = vmax.f32 %v1093_v8, 0.0  ;;  %1692 = vmatmul.bf16.gmra.mxu1 %v1604_v44  ;;  %1256 = vadd.xlane.f32.xlu2 %v1235_v5 }
 0x33b   :  { %v1200_v43 = vmul.f32 %v1184_v22, %v3043_v10 }
 0x33d   :  { %v1216_v15 = vadd.f32 %v1200_v43, %v3200_v32 }
 0x33f   :  { %v1236_v54 = vmul.f32 %v3267_v34, %v1216_v15 }
 0x340   :  { %v1095_v59 = vpop.f32.mrf.mxu3 }
 0x341   :  { %v1185_v55 = vmax.f32 %v1095_v59, 0.0  ;;  %1258 = vadd.xlane.f32.xlu0 %v1236_v54 }
 0x343   :  { %v1201_v16 = vmul.f32 %v1185_v55, %v3045_v11 }
 0x345   :  { %v1217_v58 = vadd.f32 %v1201_v16, %v3203_v3 }
 0x347   :  { %v1605_v17 = vpack.c.bf16 %v1217_v58, %v1216_v15  ;;  %v1237_v23 = vmul.f32 %v3267_v34, %v1217_v58 }
 0x348   :  { %v1113_v9 = vpop.f32.mrf.mxu3 }
 0x349   :  { %v1186_v25 = vmax.f32 %v1113_v9, 0.0  ;;  %1697 = vmatmul.bf16.gmra.mxu1 %v1605_v17  ;;  %1260 = vadd.xlane.f32.xlu1 %v1237_v23  ;;  %v3316_v17 = vld [vmem:[#allocation2] ss:$0 sm:$0xff] }
 0x34b   :  { %v1202_v26 = vmul.f32 %v1186_v25, %v3059_v20 }
 0x34d   :  { %v1218_v32 = vadd.f32 %v1202_v26, %v3210_v62 }
 0x34f   :  { %v1238_v56 = vmul.f32 %v3267_v34, %v1218_v32 }
 0x350   :  { %v1115_v31 = vpop.f32.mrf.mxu3 }
 0x351   :  { %v1187_v4 = vmax.f32 %v1115_v31, 0.0  ;;  %1262 = vadd.xlane.f32.xlu2 %v1238_v56 }
 0x353   :  { %v1203_v36 = vmul.f32 %v1187_v4, %v3057_v19 }
 0x355   :  { %v1219_v3 = vadd.f32 %v1203_v36, %v3213_v12 }
 0x357   :  { %v1606_v33 = vpack.c.bf16 %v1219_v3, %v1218_v32  ;;  %v1239_v41 = vmul.f32 %v3267_v34, %v1219_v3 }
 0x358   :  { %v1133_v7 = vpop.f32.mrf.mxu3 }
 0x359   :  { %v1188_v45 = vmax.f32 %v1133_v7, 0.0  ;;  %1702 = vmatmul.bf16.vlgmr.msrb.gmra.mxu3 %v1606_v33  ;;  %1264 = vadd.xlane.f32.xlu0 %v1239_v41 }
 0x35b   :  { %v1204_v46 = vmul.f32 %v1188_v45, %v3071_v28 }
 0x35d   :  { %v1220_v62 = vadd.f32 %v1204_v46, %v3220_v14 }
 0x35f   :  { %v1240_v35 = vmul.f32 %v3267_v34, %v1220_v62 }
 0x360   :  { %v1135_v6 = vpop.f32.mrf.mxu3 }
 0x361   :  { %v1189_v47 = vmax.f32 %v1135_v6, 0.0  ;;  %1266 = vadd.xlane.f32.xlu1 %v1240_v35 }
 0x362   :  { %v1153_v40 = vpop.f32.mrf.mxu0 }
 0x363   :  { %v1205_v24 = vmul.f32 %v1189_v47, %v3073_v29  ;;  %v1190_v12 = vmax.f32 %v1153_v40, 0.0 }
 0x365   :  { %v1206_v13 = vmul.f32 %v1190_v12, %v3085_v37  ;;  %v1221_v63 = vadd.f32 %v1205_v24, %v3223_v21 }
 0x367   :  { %v1607_v50 = vpack.c.bf16 %v1221_v63, %v1220_v62  ;;  %v1241_v0 = vmul.f32 %v3267_v34, %v1221_v63  ;;  %v1222_v1 = vadd.f32 %v1206_v13, %v3230_v27 }
 0x369   :  { %1707 = vmatmul.bf16.gmra.mxu3 %v1607_v50  ;;  %1268 = vadd.xlane.f32.xlu2 %v1241_v0  ;;  %v1242_v14 = vmul.f32 %v3267_v34, %v1222_v1 }
 0x36a   :  { %v1155_v18 = vpop.f32.mrf.mxu0 }
 0x36b   :  { %v1191_v49 = vmax.f32 %v1155_v18, 0.0  ;;  %1270 = vadd.xlane.f32.xlu0 %v1242_v14 }
 0x36d   :  { %v1207_v44 = vmul.f32 %v1191_v49, %v3087_v38 }
 0x36f   :  { %v1223_v5 = vadd.f32 %v1207_v44, %v3233_v30 }
 0x371   :  { %v1243_v8 = vmul.f32 %v3267_v34, %v1223_v5  ;;  %v1608_v15 = vpack.c.bf16 %v1223_v5, %v1222_v1 }
 0x372   :  { %v1173_v22 = vpop.f32.mrf.mxu0 }
 0x373   :  { %v1192_v21 = vmax.f32 %v1173_v22, 0.0  ;;  %1272 = vadd.xlane.f32.xlu1 %v1243_v8 }
 0x375   :  { %v1208_v43 = vmul.f32 %v1192_v21, %v3101_v53 }
 0x377   :  { %v1224_v27 = vadd.f32 %v1208_v43, %v3240_v60 }
 0x379   :  { %1712 = vmatmul.bf16.gmra.mxu3 %v1608_v15  ;;  %v1244_v54 = vmul.f32 %v3267_v34, %v1224_v27 }
 0x37a   :  { %v1175_v59 = vpop.f32.mrf.mxu0 }
 0x37b   :  { %v1193_v55 = vmax.f32 %v1175_v59, 0.0  ;;  %1274 = vadd.xlane.f32.xlu2 %v1244_v54 }
 0x37d   :  { %v1209_v16 = vmul.f32 %v1193_v55, %v3099_v51 }
 0x37f   :  { %v1225_v30 = vadd.f32 %v1209_v16, %v3243_v39 }
 0x381   :  { %v1245_v58 = vmul.f32 %v3267_v34, %v1225_v30  ;;  %v1609_v60 = vpack.c.bf16 %v1225_v30, %v1224_v27 }
 0x383   :  { %1276 = vadd.xlane.f32.xlu0 %v1245_v58 }
 0x384   :  { %v1247_v23 = vpop.xlane.xlu1 %1246 }
 0x385   :  { %v1282_v9 = vadd.f32 %v3316_v17, %v1247_v23 }
 0x387   :  { %v2385_v25 = vmul.f32 -1.442695, %v1282_v9 }
 0x389   :  { %2551 = vpow2.f32 %v2385_v25  ;;  %1717 = vmatmul.bf16.gmra.mxu3 %v1609_v60 }
 0x38c   :  { %v1249_v26 = vpop.xlane.xlu2 %1248 }
 0x38d   :  { %v1283_v32 = vadd.f32 %v3316_v17, %v1249_v26 }
 0x38f   :  { %v2552_v56 = vpop.eup %2551  ;;  %v2386_v31 = vmul.f32 -1.442695, %v1283_v32 }
 0x390   :  { %v1346_v4 = vadd.f32 1.0, %v2552_v56 }
 0x391   :  { %2553 = vpow2.f32 %v2386_v31 }
 0x392   :  { %2555 = vrcp.f32 %v1346_v4  ;;  %v1373_v62 = vand.u32 2147483648, %v1346_v4  ;;  %v1371_v47 = vand.u32 2147483647, %v1346_v4  ;;  %vm1367_vm2 = vweird.f32 %v1346_v4 }
 0x394   :  { %v1251_v39 = vpop.xlane.xlu0 %1250  ;;  %v1374_v50 = vor.u32 1.1754944e-38, %v1373_v62  ;;  %vm1372_vm4 = vcmp.eq.f32.partialorder %v1371_v47, 8.507059e+37 }
 0x395   :  { %v1284_v34 = vadd.f32 %v3316_v17, %v1251_v39 }
 0x397   :  { %v2554_v36 = vpop.eup %2553  ;;  %v2387_v3 = vmul.f32 -1.442695, %v1284_v34 }
 0x398   :  { %v2556_v33 = vpop.eup %2555  ;;  %v1347_v41 = vadd.f32 1.0, %v2554_v36 }
 0x399   :  { %2557 = vpow2.f32 %v2387_v3  ;;  %v1363_v7 = vmul.f32 %v2556_v33, %v1346_v4  ;;  %vm1368_vm1 = vweird.f32 %v2556_v33 }
 0x39a   :  { %2559 = vrcp.f32 %v1347_v41  ;;  %vm1369_vm3 = vmor %vm1367_vm2, %vm1368_vm1  ;;  %v1388_v44 = vand.u32 2147483648, %v1347_v41  ;;  %v1386_v22 = vand.u32 2147483647, %v1347_v41  ;;  %vm1382_vm6 = vweird.f32 %v1347_v41 }
 0x39b   :  { %v1364_v45 = vsub.f32 1.0, %v1363_v7 }
 0x39c   :  { %v1253_v46 = vpop.xlane.xlu2 %1252  ;;  %v1389_v59 = vor.u32 1.1754944e-38, %v1388_v44  ;;  %vm1387_vm8 = vcmp.eq.f32.partialorder %v1386_v22, 8.507059e+37 }
 0x39d   :  { %v1285_v35 = vadd.f32 %v3316_v17, %v1253_v46  ;;  %v1365_v6 = vmul.f32 %v2556_v33, %v1364_v45 }
 0x39f   :  { %v2558_v40 = vpop.eup %2557  ;;  %v2388_v24 = vmul.f32 -1.442695, %v1285_v35  ;;  %v1366_v12 = vadd.f32 %v2556_v33, %v1365_v6 }
 0x3a0   :  { %v2560_v13 = vpop.eup %2559  ;;  %v1348_v63 = vadd.f32 1.0, %v2558_v40 }
 0x3a1   :  { %2561 = vpow2.f32 %v2388_v24  ;;  %v1370_v0 = vsel %vm1369_vm3, %v2556_v33, %v1366_v12  ;;  %v1378_v1 = vmul.f32 %v2560_v13, %v1347_v41  ;;  %vm1383_vm5 = vweird.f32 %v2560_v13 }
 0x3a2   :  { %2563 = vrcp.f32 %v1348_v63  ;;  %v1375_v14 = vsel %vm1372_vm4, %v1374_v50, %v1370_v0  ;;  %vm1384_vm7 = vmor %vm1382_vm6, %vm1383_vm5  ;;  %v1403_v9 = vand.u32 2147483648, %v1348_v63  ;;  %v1401_v26 = vand.u32 2147483647, %v1348_v63 }
 0x3a3   :  { %1761 = vperm.xlu1 %2543, %v1375_v14   ;;  %v1379_v18 = vsub.f32 1.0, %v1378_v1  ;;  %vm1397_vm10 = vweird.f32 %v1348_v63 }
 0x3a4   :  { %v1255_v49 = vpop.xlane.xlu1 %1254  ;;  %v1404_v34 = vor.u32 1.1754944e-38, %v1403_v9  ;;  %vm1402_vm12 = vcmp.eq.f32.partialorder %v1401_v26, 8.507059e+37 }
 0x3a5   :  { %v1286_v5 = vadd.f32 %v3316_v17, %v1255_v49  ;;  %v1380_v8 = vmul.f32 %v2560_v13, %v1379_v18 }
 0x3a7   :  { %v2562_v21 = vpop.eup %2561  ;;  %v2389_v43 = vmul.f32 -1.442695, %v1286_v5  ;;  %v1381_v15 = vadd.f32 %v2560_v13, %v1380_v8 }
 0x3a8   :  { %v2564_v27 = vpop.eup %2563  ;;  %v1349_v54 = vadd.f32 1.0, %v2562_v21 }
 0x3a9   :  { %2565 = vpow2.f32 %v2389_v43  ;;  %v1385_v55 = vsel %vm1384_vm7, %v2560_v13, %v1381_v15  ;;  %v1393_v16 = vmul.f32 %v2564_v27, %v1348_v63  ;;  %vm1398_vm9 = vweird.f32 %v2564_v27 }
 0x3aa   :  { %2567 = vrcp.f32 %v1349_v54  ;;  %v1390_v30 = vsel %vm1387_vm8, %v1389_v59, %v1385_v55  ;;  %vm1399_vm11 = vmor %vm1397_vm10, %vm1398_vm9  ;;  %v1418_v45 = vand.u32 2147483648, %v1349_v54  ;;  %v1416_v35 = vand.u32 2147483647, %v1349_v54 }
 0x3ab   :  { %1766 = vperm.xlu2 %2544, %v1390_v30   ;;  %v1394_v58 = vsub.f32 1.0, %v1393_v16  ;;  %vm1412_vm14 = vweird.f32 %v1349_v54 }
 0x3ac   :  { %v1257_v23 = vpop.xlane.xlu2 %1256  ;;  %v1419_v13 = vor.u32 1.1754944e-38, %v1418_v45  ;;  %vm1417_vm0 = vcmp.eq.f32.partialorder %v1416_v35, 8.507059e+37 }
 0x3ad   :  { %v1287_v25 = vadd.f32 %v3316_v17, %v1257_v23  ;;  %v1395_v60 = vmul.f32 %v2564_v27, %v1394_v58 }
 0x3af   :  { %v2566_v32 = vpop.eup %2565  ;;  %v2390_v56 = vmul.f32 -1.442695, %v1287_v25  ;;  %v1396_v31 = vadd.f32 %v2564_v27, %v1395_v60 }
 0x3b0   :  { %v2568_v4 = vpop.eup %2567  ;;  %v1350_v39 = vadd.f32 1.0, %v2566_v32 }
 0x3b1   :  { %2569 = vpow2.f32 %v2390_v56  ;;  %v1400_v36 = vsel %vm1399_vm11, %v2564_v27, %v1396_v31  ;;  %v1408_v3 = vmul.f32 %v2568_v4, %v1349_v54  ;;  %vm1413_vm13 = vweird.f32 %v2568_v4 }
 0x3b2   :  { %2571 = vrcp.f32 %v1350_v39  ;;  %v1405_v33 = vsel %vm1402_vm12, %v1404_v34, %v1400_v36  ;;  %vm1414_vm15 = vmor %vm1412_vm14, %vm1413_vm13  ;;  %v1433_v18 = vand.u32 2147483648, %v1350_v39  ;;  %v1431_v5 = vand.u32 2147483647, %v1350_v39 }
 0x3b3   :  { %1771 = vperm.xlu0 %2542, %v1405_v33   ;;  %v1409_v41 = vsub.f32 1.0, %v1408_v3  ;;  %vm1427_vm2 = vweird.f32 %v1350_v39 }
 0x3b4   :  { %v1259_v7 = vpop.xlane.xlu0 %1258  ;;  %v1434_v27 = vor.u32 1.1754944e-38, %v1433_v18  ;;  %vm1432_vm4 = vcmp.eq.f32.partialorder %v1431_v5, 8.507059e+37 }
 0x3b5   :  { %v1288_v46 = vadd.f32 %v3316_v17, %v1259_v7  ;;  %v1410_v62 = vmul.f32 %v2568_v4, %v1409_v41 }
 0x3b7   :  { %v2570_v6 = vpop.eup %2569  ;;  %v2391_v47 = vmul.f32 -1.442695, %v1288_v46  ;;  %v1411_v40 = vadd.f32 %v2568_v4, %v1410_v62 }
 0x3b8   :  { %v2572_v24 = vpop.eup %2571  ;;  %v1351_v12 = vadd.f32 1.0, %v2570_v6 }
 0x3b9   :  { %2573 = vpow2.f32 %v2391_v47  ;;  %v1415_v63 = vsel %vm1414_vm15, %v2568_v4, %v1411_v40  ;;  %v1423_v50 = vmul.f32 %v2572_v24, %v1350_v39  ;;  %vm1428_vm1 = vweird.f32 %v2572_v24 }
 0x3ba   :  { %2575 = vrcp.f32 %v1351_v12  ;;  %v1420_v0 = vsel %vm1417_vm0, %v1419_v13, %v1415_v63  ;;  %vm1429_vm3 = vmor %vm1427_vm2, %vm1428_vm1  ;;  %v1448_v58 = vand.u32 2147483648, %v1351_v12  ;;  %v1446_v25 = vand.u32 2147483647, %v1351_v12 }
 0x3bb   :  { %1776 = vperm.xlu1 %2543, %v1420_v0   ;;  %v1424_v1 = vsub.f32 1.0, %v1423_v50  ;;  %vm1442_vm6 = vweird.f32 %v1351_v12 }
 0x3bc   :  { %v1261_v14 = vpop.xlane.xlu1 %1260  ;;  %v1449_v4 = vor.u32 1.1754944e-38, %v1448_v58  ;;  %vm1447_vm8 = vcmp.eq.f32.partialorder %v1446_v25, 8.507059e+37 }
 0x3bd   :  { %v1289_v49 = vadd.f32 %v3316_v17, %v1261_v14  ;;  %v1425_v44 = vmul.f32 %v2572_v24, %v1424_v1 }
 0x3bf   :  { %v2574_v8 = vpop.eup %2573  ;;  %v2392_v22 = vmul.f32 -1.442695, %v1289_v49  ;;  %v1426_v21 = vadd.f32 %v2572_v24, %v1425_v44 }
 0x3c0   :  { %v2576_v43 = vpop.eup %2575  ;;  %v1352_v15 = vadd.f32 1.0, %v2574_v8 }
 0x3c1   :  { %2577 = vpow2.f32 %v2392_v22  ;;  %v1430_v54 = vsel %vm1429_vm3, %v2572_v24, %v1426_v21  ;;  %v1438_v59 = vmul.f32 %v2576_v43, %v1351_v12  ;;  %vm1443_vm5 = vweird.f32 %v2576_v43 }
 0x3c2   :  { %2579 = vrcp.f32 %v1352_v15  ;;  %v1435_v55 = vsel %vm1432_vm4, %v1434_v27, %v1430_v54  ;;  %vm1444_vm7 = vmor %vm1442_vm6, %vm1443_vm5  ;;  %v1463_v41 = vand.u32 2147483648, %v1352_v15  ;;  %v1461_v46 = vand.u32 2147483647, %v1352_v15 }
 0x3c3   :  { %1781 = vperm.xlu0 %2542, %v1435_v55   ;;  %v1439_v16 = vsub.f32 1.0, %v1438_v59  ;;  %vm1457_vm10 = vweird.f32 %v1352_v15 }
 0x3c4   :  { %v1263_v30 = vpop.xlane.xlu2 %1262  ;;  %v1464_v24 = vor.u32 1.1754944e-38, %v1463_v41  ;;  %vm1462_vm12 = vcmp.eq.f32.partialorder %v1461_v46, 8.507059e+37 }
 0x3c5   :  { %v1290_v23 = vadd.f32 %v3316_v17, %v1263_v30  ;;  %v1440_v9 = vmul.f32 %v2576_v43, %v1439_v16 }
 0x3c7   :  { %v2578_v60 = vpop.eup %2577  ;;  %v2393_v26 = vmul.f32 -1.442695, %v1290_v23  ;;  %v1441_v32 = vadd.f32 %v2576_v43, %v1440_v9 }
 0x3c8   :  { %v2580_v56 = vpop.eup %2579  ;;  %v1353_v31 = vadd.f32 1.0, %v2578_v60 }
 0x3c9   :  { %2581 = vpow2.f32 %v2393_v26  ;;  %v1445_v39 = vsel %vm1444_vm7, %v2576_v43, %v1441_v32  ;;  %v1453_v34 = vmul.f32 %v2580_v56, %v1352_v15  ;;  %vm1458_vm9 = vweird.f32 %v2580_v56 }
 0x3ca   :  { %2583 = vrcp.f32 %v1353_v31  ;;  %v1450_v36 = vsel %vm1447_vm8, %v1449_v4, %v1445_v39  ;;  %vm1459_vm11 = vmor %vm1457_vm10, %vm1458_vm9  ;;  %v1478_v1 = vand.u32 2147483648, %v1353_v31  ;;  %v1476_v49 = vand.u32 2147483647, %v1353_v31 }
 0x3cb   :  { %1786 = vperm.xlu2 %2544, %v1450_v36   ;;  %v1454_v3 = vsub.f32 1.0, %v1453_v34  ;;  %vm1472_vm14 = vweird.f32 %v1353_v31 }
 0x3cc   :  { %v1265_v33 = vpop.xlane.xlu0 %1264  ;;  %v1479_v43 = vor.u32 1.1754944e-38, %v1478_v1  ;;  %vm1477_vm0 = vcmp.eq.f32.partialorder %v1476_v49, 8.507059e+37 }
 0x3cd   :  { %v1291_v7 = vadd.f32 %v3316_v17, %v1265_v33  ;;  %v1455_v45 = vmul.f32 %v2580_v56, %v1454_v3 }
 0x3cf   :  { %v2582_v62 = vpop.eup %2581  ;;  %v2394_v35 = vmul.f32 -1.442695, %v1291_v7  ;;  %v1456_v6 = vadd.f32 %v2580_v56, %v1455_v45 }
 0x3d0   :  { %v2584_v47 = vpop.eup %2583  ;;  %v1354_v40 = vadd.f32 1.0, %v2582_v62 }
 0x3d1   :  { %2585 = vpow2.f32 %v2394_v35  ;;  %v1460_v12 = vsel %vm1459_vm11, %v2580_v56, %v1456_v6  ;;  %v1468_v13 = vmul.f32 %v2584_v47, %v1353_v31  ;;  %vm1473_vm13 = vweird.f32 %v2584_v47 }
 0x3d2   :  { %2587 = vrcp.f32 %v1354_v40  ;;  %v1465_v63 = vsel %vm1462_vm12, %v1464_v24, %v1460_v12  ;;  %vm1474_vm15 = vmor %vm1472_vm14, %vm1473_vm13  ;;  %v1491_v16 = vand.u32 2147483647, %v1354_v40  ;;  %v1493_v30 = vand.u32 2147483648, %v1354_v40 }
 0x3d3   :  { %1791 = vperm.xlu1 %2543, %v1465_v63   ;;  %v1469_v50 = vsub.f32 1.0, %v1468_v13  ;;  %vm1487_vm2 = vweird.f32 %v1354_v40 }
 0x3d4   :  { %v1267_v0 = vpop.xlane.xlu1 %1266  ;;  %vm1492_vm4 = vcmp.eq.f32.partialorder %v1491_v16, 8.507059e+37  ;;  %v1494_v4 = vor.u32 1.1754944e-38, %v1493_v30 }
 0x3d5   :  { %v1292_v14 = vadd.f32 %v3316_v17, %v1267_v0  ;;  %v1470_v18 = vmul.f32 %v2584_v47, %v1469_v50 }
 0x3d7   :  { %v2586_v44 = vpop.eup %2585  ;;  %v2395_v5 = vmul.f32 -1.442695, %v1292_v14  ;;  %v1471_v8 = vadd.f32 %v2584_v47, %v1470_v18 }
 0x3d8   :  { %v2588_v22 = vpop.eup %2587  ;;  %v1355_v21 = vadd.f32 1.0, %v2586_v44 }
 0x3d9   :  { %2589 = vpow2.f32 %v2395_v5  ;;  %v1475_v15 = vsel %vm1474_vm15, %v2584_v47, %v1471_v8  ;;  %v1483_v27 = vmul.f32 %v2588_v22, %v1354_v40  ;;  %vm1488_vm1 = vweird.f32 %v2588_v22 }
 0x3da   :  { %2591 = vrcp.f32 %v1355_v21  ;;  %v1480_v54 = vsel %vm1477_vm0, %v1479_v43, %v1475_v15  ;;  %vm1489_vm3 = vmor %vm1487_vm2, %vm1488_vm1  ;;  %v1508_v41 = vand.u32 2147483648, %v1355_v21  ;;  %v1506_v45 = vand.u32 2147483647, %v1355_v21 }
 0x3db   :  { %1796 = vperm.xlu0 %2542, %v1480_v54   ;;  %v1484_v59 = vsub.f32 1.0, %v1483_v27  ;;  %vm1502_vm6 = vweird.f32 %v1355_v21 }
 0x3dc   :  { %v1269_v55 = vpop.xlane.xlu2 %1268  ;;  %v1509_v24 = vor.u32 1.1754944e-38, %v1508_v41  ;;  %vm1507_vm8 = vcmp.eq.f32.partialorder %v1506_v45, 8.507059e+37 }
 0x3dd   :  { %v1293_v58 = vadd.f32 %v3316_v17, %v1269_v55  ;;  %v1485_v23 = vmul.f32 %v2588_v22, %v1484_v59 }
 0x3de   :  { %v1271_v9 = vpop.xlane.xlu0 %1270 }
 0x3df   :  { %v2590_v25 = vpop.eup %2589  ;;  %v2396_v60 = vmul.f32 -1.442695, %v1293_v58  ;;  %v1294_v26 = vadd.f32 %v3316_v17, %v1271_v9  ;;  %v1486_v32 = vadd.f32 %v2588_v22, %v1485_v23 }
 0x3e0   :  { %v2592_v56 = vpop.eup %2591  ;;  %v1356_v31 = vadd.f32 1.0, %v2590_v25 }
 0x3e1   :  { %2593 = vpow2.f32 %v2396_v60  ;;  %v2397_v39 = vmul.f32 -1.442695, %v1294_v26  ;;  %v1490_v34 = vsel %vm1489_vm3, %v2588_v22, %v1486_v32  ;;  %v1498_v36 = vmul.f32 %v2592_v56, %v1355_v21 }
 0x3e2   :  { %2595 = vrcp.f32 %v1356_v31  ;;  %v1495_v3 = vsel %vm1492_vm4, %v1494_v4, %v1490_v34  ;;  %vm1503_vm5 = vweird.f32 %v2592_v56  ;;  %v1523_v18 = vand.u32 2147483648, %v1356_v31 }
 0x3e3   :  { %2597 = vpow2.f32 %v2397_v39  ;;  %1801 = vperm.xlu2 %2544, %v1495_v3   ;;  %v1499_v33 = vsub.f32 1.0, %v1498_v36  ;;  %vm1504_vm7 = vmor %vm1502_vm6, %vm1503_vm5  ;;  %v1521_v44 = vand.u32 2147483647, %v1356_v31  ;;  %vm1517_vm10 = vweird.f32 %v1356_v31 }
 0x3e4   :  { %v1524_v43 = vor.u32 1.1754944e-38, %v1523_v18 }
 0x3e5   :  { %v1500_v7 = vmul.f32 %v2592_v56, %v1499_v33  ;;  %vm1522_vm12 = vcmp.eq.f32.partialorder %v1521_v44, 8.507059e+37 }
 0x3e6   :  { %v1273_v46 = vpop.xlane.xlu1 %1272 }
 0x3e7   :  { %v2594_v62 = vpop.eup %2593  ;;  %v1295_v35 = vadd.f32 %v3316_v17, %v1273_v46  ;;  %v1501_v6 = vadd.f32 %v2592_v56, %v1500_v7 }
 0x3e8   :  { %v2596_v47 = vpop.eup %2595  ;;  %v1357_v40 = vadd.f32 1.0, %v2594_v62 }
 0x3e9   :  { %v2598_v12 = vpop.eup %2597  ;;  %v2398_v13 = vmul.f32 -1.442695, %v1295_v35  ;;  %v1505_v63 = vsel %vm1504_vm7, %v2592_v56, %v1501_v6  ;;  %v1513_v50 = vmul.f32 %v2596_v47, %v1356_v31  ;;  %vm1518_vm9 = vweird.f32 %v2596_v47 }
 0x3ea   :  { %2599 = vrcp.f32 %v1357_v40  ;;  %v1358_v0 = vadd.f32 1.0, %v2598_v12  ;;  %v1510_v1 = vsel %vm1507_vm8, %v1509_v24, %v1505_v63  ;;  %vm1519_vm11 = vmor %vm1517_vm10, %vm1518_vm9  ;;  %v1538_v9 = vand.u32 2147483648, %v1357_v40 }
 0x3eb   :  { %2601 = vpow2.f32 %v2398_v13  ;;  %1806 = vperm.xlu1 %2543, %v1510_v1   ;;  %v1514_v14 = vsub.f32 1.0, %v1513_v50  ;;  %v1536_v60 = vand.u32 2147483647, %v1357_v40  ;;  %vm1532_vm14 = vweird.f32 %v1357_v40 }
 0x3ec   :  { %2603 = vrcp.f32 %v1358_v0  ;;  %v1551_v56 = vand.u32 2147483647, %v1358_v0  ;;  %v1553_v31 = vand.u32 2147483648, %v1358_v0  ;;  %v1539_v36 = vor.u32 1.1754944e-38, %v1538_v9 }
 0x3ed   :  { %v1515_v49 = vmul.f32 %v2596_v47, %v1514_v14  ;;  %vm1547_vm1 = vweird.f32 %v1358_v0  ;;  %vm1537_vm2 = vcmp.eq.f32.partialorder %v1536_v60, 8.507059e+37 }
 0x3ee   :  { %v1275_v5 = vpop.xlane.xlu2 %1274  ;;  %v1554_v35 = vor.u32 1.1754944e-38, %v1553_v31  ;;  %vm1552_vm4 = vcmp.eq.f32.partialorder %v1551_v56, 8.507059e+37 }
 0x3ef   :  { %v1296_v8 = vadd.f32 %v3316_v17, %v1275_v5  ;;  %v1516_v22 = vadd.f32 %v2596_v47, %v1515_v49 }
 0x3f0   :  { %v2600_v21 = vpop.eup %2599 }
 0x3f1   :  { %v2602_v15 = vpop.eup %2601  ;;  %v2399_v27 = vmul.f32 -1.442695, %v1296_v8  ;;  %v1520_v54 = vsel %vm1519_vm11, %v2596_v47, %v1516_v22  ;;  %v1528_v59 = vmul.f32 %v2600_v21, %v1357_v40  ;;  %vm1533_vm13 = vweird.f32 %v2600_v21 }
 0x3f2   :  { %v2604_v55 = vpop.eup %2603  ;;  %v1359_v16 = vadd.f32 1.0, %v2602_v15  ;;  %v1525_v30 = vsel %vm1522_vm12, %v1524_v43, %v1520_v54  ;;  %vm1534_vm0 = vmor %vm1532_vm14, %vm1533_vm13 }
 0x3f3   :  { %2605 = vpow2.f32 %v2399_v27  ;;  %1811 = vperm.xlu0 %2542, %v1525_v30   ;;  %v1529_v58 = vsub.f32 1.0, %v1528_v59  ;;  %v1543_v23 = vmul.f32 %v2604_v55, %v1358_v0  ;;  %vm1548_vm15 = vweird.f32 %v2604_v55 }
 0x3f4   :  { %2607 = vrcp.f32 %v1359_v16  ;;  %vm1549_vm3 = vmor %vm1547_vm1, %vm1548_vm15  ;;  %v1568_v24 = vand.u32 2147483648, %v1359_v16  ;;  %v1566_v13 = vand.u32 2147483647, %v1359_v16  ;;  %vm1562_vm6 = vweird.f32 %v1359_v16 }
 0x3f5   :  { %v1530_v25 = vmul.f32 %v2600_v21, %v1529_v58  ;;  %v1544_v26 = vsub.f32 1.0, %v1543_v23  ;;  %vm2035_vm1 = vcmask 1041409  }
 0x3f6   :  { %v1277_v32 = vpop.xlane.xlu0 %1276  ;;  %v1569_v14 = vor.u32 1.1754944e-38, %v1568_v24  ;;  %vm1567_vm8 = vcmp.eq.f32.partialorder %v1566_v13, 8.507059e+37 }
 0x3f7   :  { %v1297_v4 = vadd.f32 %v3316_v17, %v1277_v32  ;;  %v1531_v39 = vadd.f32 %v2600_v21, %v1530_v25  ;;  %v1545_v34 = vmul.f32 %v2604_v55, %v1544_v26  ;;  %v1683_v32 = vpop.f32.mrf.mxu1 }
 0x3f9   :  { %v2606_v3 = vpop.eup %2605  ;;  %v2400_v33 = vmul.f32 -1.442695, %v1297_v4  ;;  %v1535_v41 = vsel %vm1534_vm0, %v2600_v21, %v1531_v39  ;;  %v1546_v7 = vadd.f32 %v2604_v55, %v1545_v34  ;;  %v1703_v4 = vpop.f32.mrf.mxu3 }
 0x3fa   :  { %v2608_v45 = vpop.eup %2607  ;;  %v1360_v46 = vadd.f32 1.0, %v2606_v3  ;;  %v1540_v62 = vsel %vm1537_vm2, %v1539_v36, %v1535_v41  ;;  %vm2037_vm2 = vcmask 1042434  }
 0x3fb   :  { %2609 = vpow2.f32 %v2400_v33  ;;  %1816 = vperm.xlu2 %2544, %v1540_v62   ;;  %v1550_v6 = vsel %vm1549_vm3, %v2604_v55, %v1546_v7  ;;  %v1558_v17 = vmul.f32 %v2608_v45, %v1359_v16  ;;  %vm1563_vm5 = vweird.f32 %v2608_v45  ;;  %v3337_v62 = vld [vmem:[%s3392_s9] ss:$0 sm:$0xff] }
 0x3fc   :  { %2611 = vrcp.f32 %v1360_v46  ;;  %v1555_v47 = vsel %vm1552_vm4, %v1554_v35, %v1550_v6  ;;  %vm1564_vm7 = vmor %vm1562_vm6, %vm1563_vm5  ;;  %v1583_v8 = vand.u32 2147483648, %v1360_v46  ;;  %v1581_v21 = vand.u32 2147483647, %v1360_v46 }
 0x3fd   :  { %1821 = vperm.xlu1 %2543, %v1555_v47   ;;  %v1559_v40 = vsub.f32 1.0, %v1558_v17  ;;  %vm1577_vm10 = vweird.f32 %v1360_v46  ;;  %v1727_v47 = vadd.f32 %v3337_v62, %v1683_v32  ;;  %vm2039_vm3 = vcmask 1043459  }
 0x3fe   :  { %v1584_v27 = vor.u32 1.1754944e-38, %v1583_v8  ;;  %vm1582_vm12 = vcmp.eq.f32.partialorder %v1581_v21, 8.507059e+37  ;;  %vm2041_vm4 = vcmask 1044484   ;;  %vm2043_vm5 = vcmask 1045509  }
 0x3ff   :  { %v1560_v12 = vmul.f32 %v2608_v45, %v1559_v40  ;;  %v1685_v56 = vpop.f32.mrf.mxu1  ;;  %v1743_v13 = vmax.f32 %v1727_v47, 0.0  ;;  %vm2045_vm6 = vcmask 1046534  }
 0x401   :  { %v2610_v63 = vpop.eup %2609  ;;  %v1561_v50 = vadd.f32 %v2608_v45, %v1560_v12  ;;  %v1705_v34 = vpop.f32.mrf.mxu3  ;;  %v1728_v12 = vadd.f32 %v3337_v62, %v1685_v56 }
 0x402   :  { %v2612_v0 = vpop.eup %2611  ;;  %v1361_v1 = vadd.f32 1.0, %v2610_v63 }
 0x403   :  { %v1565_v18 = vsel %vm1564_vm7, %v2608_v45, %v1561_v50  ;;  %v1573_v49 = vmul.f32 %v2612_v0, %v1360_v46  ;;  %vm1578_vm9 = vweird.f32 %v2612_v0  ;;  %v1744_v50 = vmax.f32 %v1728_v12, 0.0 }
 0x404   :  { %2613 = vrcp.f32 %v1361_v1  ;;  %v1570_v44 = vsel %vm1567_vm8, %v1569_v14, %v1565_v18  ;;  %vm1579_vm11 = vmor %vm1577_vm10, %vm1578_vm9  ;;  %v1598_v30 = vand.u32 2147483648, %v1361_v1  ;;  %v1596_v23 = vand.u32 2147483647, %v1361_v1 }
 0x405   :  { %1826 = vperm.xlu0 %2542, %v1570_v44   ;;  %v1574_v5 = vsub.f32 1.0, %v1573_v49  ;;  %vm1592_vm14 = vweird.f32 %v1361_v1  ;;  %v1767_v46 = vpop.permute.xlu2 %1766  ;;  %v2521_v49 = vld [vmem:[#allocation11 + $0x38] sm:$0xff]  ;;  %vm2047_vm7 = vcmask 1047559  }
 0x406   :  { %v1599_v25 = vor.u32 1.1754944e-38, %v1598_v30  ;;  %vm1597_vm0 = vcmp.eq.f32.partialorder %v1596_v23, 8.507059e+37  ;;  %v1840_v8 = vmul.f32 %v1767_v46, %v1744_v50  ;;  %2099 = vmatpush.bf16.msrb.mxu0 %v2521_v49  ;;  %v2518_v49 = vld [vmem:[#allocation11 + $0x20] sm:$0xff] }
 0x407   :  { %v1575_v22 = vmul.f32 %v2612_v0, %v1574_v5  ;;  %v1688_v31 = vpop.f32.mrf.mxu1 }
 0x408   :  { %v1729_v44 = vadd.f32 %v3337_v62, %v1688_v31 }
 0x409   :  { %v1576_v43 = vadd.f32 %v2612_v0, %v1575_v22  ;;  %v1708_v3 = vpop.f32.mrf.mxu3 }
 0x40a   :  { %v2614_v15 = vpop.eup %2613  ;;  %v1737_v30 = vadd.f32 %v3337_v62, %v1708_v3 }
 0x40b   :  { %v1580_v54 = vsel %vm1579_vm11, %v2612_v0, %v1576_v43  ;;  %v1588_v59 = vmul.f32 %v2614_v15, %v1361_v1  ;;  %vm1593_vm13 = vweird.f32 %v2614_v15 }
 0x40c   :  { %v1585_v55 = vsel %vm1582_vm12, %v1584_v27, %v1580_v54  ;;  %vm1594_vm15 = vmor %vm1592_vm14, %vm1593_vm13  ;;  %v1736_v27 = vadd.f32 %v3337_v62, %v1705_v34  ;;  %v1753_v46 = vmax.f32 %v1737_v30, 0.0 }
 0x40d   :  { %1831 = vperm.xlu2 %2544, %v1585_v55   ;;  %v1589_v16 = vsub.f32 1.0, %v1588_v59  ;;  %v2520_v59 = vld [vmem:[#allocation11 + $0x30] sm:$0xff]  ;;  %v1745_v55 = vmax.f32 %v1729_v44, 0.0 }
 0x40e   :  { %2100 = vmatpush.bf16.msrb.mxu0 %v2520_v59 }
 0x40f   :  { %v1590_v58 = vmul.f32 %v2614_v15, %v1589_v16  ;;  %v1690_v39 = vpop.f32.mrf.mxu1 }
 0x410   :  { %v1730_v0 = vadd.f32 %v3337_v62, %v1690_v39 }
 0x411   :  { %v1591_v9 = vadd.f32 %v2614_v15, %v1590_v58  ;;  %v1710_v45 = vpop.f32.mrf.mxu3 }
 0x412   :  { %v1738_v56 = vadd.f32 %v3337_v62, %v1710_v45 }
 0x413   :  { %v1595_v60 = vsel %vm1594_vm15, %v2614_v15, %v1591_v9  ;;  %v1746_v15 = vmax.f32 %v1730_v0, 0.0  ;;  %v1735_v9 = vadd.f32 %v3337_v62, %v1703_v4 }
 0x414   :  { %v1600_v26 = vsel %vm1597_vm0, %v1599_v25, %v1595_v60  ;;  %v1856_v25 = vmul.f32 %v1840_v8, %v3003_v48 }
 0x415   :  { %1836 = vperm.xlu1 %2543, %v1600_v26   ;;  %v1762_v41 = vpop.permute.xlu1 %1761  ;;  %v1751_v47 = vmax.f32 %v1735_v9, 0.0 }
 0x416   :  { %v1839_v14 = vmul.f32 %v1762_v41, %v1743_v13  ;;  %v2519_v41 = vld [vmem:[#allocation11 + $0x28] sm:$0xff]  ;;  %v1754_v13 = vmax.f32 %v1738_v56, 0.0 }
 0x417   :  { %v1693_v36 = vpop.f32.mrf.mxu1  ;;  %2101 = vmatpush.bf16.msrb.mxu0 %v2519_v41 }
 0x418   :  { %v1731_v5 = vadd.f32 %v3337_v62, %v1693_v36  ;;  %v1855_v54 = vmul.f32 %v1839_v14, %v2994_v42  ;;  %v1752_v42 = vmax.f32 %v1736_v27, 0.0 }
 0x419   :  { %v1713_v24 = vpop.f32.mrf.mxu3 }
 0x41a   :  { %v1747_v23 = vmax.f32 %v1731_v5, 0.0  ;;  %v1871_v39 = vadd.f32 %v1856_v25, %v1855_v54  ;;  %v1927_v50 = vmax.f32 %v1855_v54, %v1856_v25 }
 0x41b   :  { %2102 = vmatpush.bf16.msrb.mxu0 %v2518_v49 }
 0x41f   :  { %v1695_v33 = vpop.f32.mrf.mxu1 }
 0x420   :  { %v1732_v21 = vadd.f32 %v3337_v62, %v1695_v33 }
 0x421   :  { %v1715_v58 = vpop.f32.mrf.mxu3 }
 0x422   :  { %v1748_v26 = vmax.f32 %v1732_v21, 0.0 }
 0x425   :  { %v1772_v7 = vpop.permute.xlu0 %1771  ;;  %v1787_v40 = vpop.permute.xlu2 %1786 }
 0x426   :  { %v1841_v34 = vmul.f32 %v1772_v7, %v1745_v55  ;;  %v1844_v4 = vmul.f32 %v1787_v40, %v1748_v26 }
 0x427   :  { %v1698_v35 = vpop.f32.mrf.mxu1 }
 0x428   :  { %v1733_v16 = vadd.f32 %v3337_v62, %v1698_v35  ;;  %v1857_v7 = vmul.f32 %v1841_v34, %v3013_v52  ;;  %v1928_v52 = vrot.slane %v1927_v50, 4 }
 0x42a   :  { %v1749_v3 = vmax.f32 %v1733_v16, 0.0 }
 0x42d   :  { %v1777_v6 = vpop.permute.xlu1 %1776 }
 0x42e   :  { %v1842_v60 = vmul.f32 %v1777_v6, %v1746_v15 }
 0x42f   :  { %v1700_v1 = vpop.f32.mrf.mxu1 }
 0x430   :  { %v1734_v43 = vadd.f32 %v3337_v62, %v1700_v1  ;;  %v1858_v48 = vmul.f32 %v1842_v60, %v3017_v57  ;;  %v1872_v1 = vrot.slane %v1871_v39, 4  ;;  %v1860_v57 = vmul.f32 %v1844_v4, %v3031_v2  ;;  %v2517_v2 = vld [vmem:[#allocation11 + $0x18] sm:$0xff] }
 0x431   :  { %2103 = vmatpush.bf16.msrb.mxu0 %v2517_v2 }
 0x432   :  { %v1750_v32 = vmax.f32 %v1734_v43, 0.0  ;;  %v1878_v5 = vadd.f32 %v1858_v48, %v1857_v7  ;;  %v1934_v8 = vmax.f32 %v1857_v7, %v1858_v48  ;;  %v1718_v43 = vpop.f32.mrf.mxu3  ;;  %v1873_v15 = vadd.f32 %v1872_v1, %v1871_v39 }
 0x433   :  { %v3366_v39 = vadd.f32 %v3337_v62, %v1718_v43 }
 0x434   :  { %v1879_v30 = vrot.slane %v1878_v5, 4  ;;  %v1874_v26 = vrot.slane %v1873_v15, 2 }
 0x435   :  { %v1782_v17 = vpop.permute.xlu0 %1781 }
 0x436   :  { %v1843_v36 = vmul.f32 %v1782_v17, %v1747_v23 }
 0x438   :  { %v1859_v17 = vmul.f32 %v1843_v36, %v3027_v61 }
 0x43a   :  { %v1941_v27 = vmax.f32 %v1859_v17, %v1860_v57 }
 0x43d   :  { %v1802_v22 = vpop.permute.xlu2 %1801 }
 0x43e   :  { %v1847_v14 = vmul.f32 %v1802_v22, %v1751_v47 }
 0x445   :  { %v1792_v63 = vpop.permute.xlu1 %1791 }
 0x446   :  { %v1845_v45 = vmul.f32 %v1792_v63, %v1749_v3  ;;  %v1740_v63 = vadd.f32 %v3337_v62, %v1715_v58  ;;  %v1935_v58 = vrot.slane %v1934_v8, 4 }
 0x448   :  { %v1861_v61 = vmul.f32 %v1845_v45, %v3043_v10  ;;  %v1756_v10 = vmax.f32 %v1740_v63, 0.0  ;;  %v1936_v41 = vmax.f32 %v1934_v8, %v1935_v58 }
 0x44d   :  { %v1797_v18 = vpop.permute.xlu0 %1796 }
 0x44e   :  { %v1846_v35 = vmul.f32 %v1797_v18, %v1750_v32  ;;  %v1739_v18 = vadd.f32 %v3337_v62, %v1713_v24  ;;  %v1885_v24 = vadd.f32 %v1860_v57, %v1859_v17  ;;  %v1929_v32 = vmax.f32 %v1927_v50, %v1928_v52  ;;  %v2514_v57 = vld [vmem:[#allocation11] sm:$0xff] }
 0x450   :  { %v1862_v40 = vmul.f32 %v1846_v35, %v3045_v11  ;;  %v1863_v11 = vmul.f32 %v1847_v14, %v3059_v20  ;;  %v1755_v59 = vmax.f32 %v1739_v18, 0.0  ;;  %v1886_v56 = vrot.slane %v1885_v24, 4 }
 0x451   :  { %v1942_v20 = vrot.slane %v1941_v27, 4  ;;  %v1937_v18 = vrot.slane %v1936_v41, 2 }
 0x452   :  { %v1892_v55 = vadd.f32 %v1862_v40, %v1861_v61  ;;  %v1948_v16 = vmax.f32 %v1861_v61, %v1862_v40  ;;  %v1887_v50 = vadd.f32 %v1886_v56, %v1885_v24 }
 0x453   :  { %v1943_v45 = vmax.f32 %v1941_v27, %v1942_v20 }
 0x454   :  { %v1893_v34 = vrot.slane %v1892_v55, 4  ;;  %v1888_v43 = vrot.slane %v1887_v50, 2 }
 0x455   :  { %v1817_v6 = vpop.permute.xlu2 %1816  ;;  %v1944_v52 = vrot.slane %v1943_v45, 2 }
 0x456   :  { %v1850_v44 = vmul.f32 %v1817_v6, %v1754_v13  ;;  %v2515_v6 = vld [vmem:[#allocation11 + $0x8] sm:$0xff]  ;;  %v1930_v13 = vrot.slane %v1929_v32, 2  ;;  %v1894_v1 = vadd.f32 %v1893_v34, %v1892_v55 }
 0x457   :  { %v1945_v58 = vmax.f32 %v1943_v45, %v1944_v52 }
 0x458   :  { %v1931_v63 = vmax.f32 %v1929_v32, %v1930_v13  ;;  %v1895_v61 = vrot.slane %v1894_v1, 2 }
 0x45d   :  { %v1807_v31 = vpop.permute.xlu1 %1806 }
 0x45e   :  { %v1848_v12 = vmul.f32 %v1807_v31, %v1752_v42  ;;  %v2516_v42 = vld [vmem:[#allocation11 + $0x10] sm:$0xff] }
 0x45f   :  { %2104 = vmatpush.bf16.msrb.mxu0 %v2516_v42 }
 0x460   :  { %v1864_v21 = vmul.f32 %v1848_v12, %v3057_v19  ;;  %v1866_v19 = vmul.f32 %v1850_v44, %v3073_v29  ;;  %v1949_v29 = vrot.slane %v1948_v16, 4  ;;  %v1875_v12 = vadd.f32 %v1874_v26, %v1873_v15 }
 0x461   :  { %v1896_v26 = vadd.f32 %v1895_v61, %v1894_v1 }
 0x462   :  { %v1899_v23 = vadd.f32 %v1864_v21, %v1863_v11  ;;  %v1955_v9 = vmax.f32 %v1863_v11, %v1864_v21  ;;  %v1950_v7 = vmax.f32 %v1948_v16, %v1949_v29  ;;  %v1938_v11 = vmax.f32 %v1936_v41, %v1937_v18 }
 0x463   :  { %2105 = vmatpush.bf16.msrb.mxu0 %v2515_v6  ;;  %v1876_v55 = vrot.slane %v1875_v12, 1  ;;  %v1897_v6 = vrot.slane %v1896_v26, 1 }
 0x464   :  { %v1900_v3 = vrot.slane %v1899_v23, 4  ;;  %v1939_v20 = vrot.slane %v1938_v11, 1 }
 0x465   :  { %v1812_v33 = vpop.permute.xlu0 %1811  ;;  %v1877_v34 = vadd.f32 %v1876_v55, %v1875_v12  ;;  %v2124_v12 = vld [vmem:[#allocation12 + $0x58] sm:$0xff] }
 0x466   :  { %v1849_v0 = vmul.f32 %v1812_v33, %v1753_v46  ;;  %v1880_v33 = vadd.f32 %v1879_v30, %v1878_v5  ;;  %v1956_v46 = vrot.slane %v1955_v9, 4  ;;  %v1901_v40 = vadd.f32 %v1900_v3, %v1899_v23 }
 0x467   :  { %2106 = vmatpush.bf16.msrb.mxu0 %v2514_v57  ;;  %v1889_v30 = vadd.f32 %v1888_v43, %v1887_v50  ;;  %v1946_v3 = vrot.slane %v1945_v58, 1 }
 0x468   :  { %v1865_v22 = vmul.f32 %v1849_v0, %v3071_v28  ;;  %v1720_v0 = vpop.f32.mrf.mxu3  ;;  %v1881_v49 = vrot.slane %v1880_v33, 2  ;;  %v1957_v44 = vmax.f32 %v1955_v9, %v1956_v46 }
 0x469   :  { %v1742_v21 = vadd.f32 %v3337_v62, %v1720_v0  ;;  %v1832_v62 = vpop.permute.xlu2 %1831  ;;  %v1890_v41 = vrot.slane %v1889_v30, 1  ;;  %v1940_v0 = vmax.f32 %v1938_v11, %v1939_v20 }
 0x46a   :  { %v1906_v25 = vadd.f32 %v1866_v19, %v1865_v22  ;;  %v1962_v28 = vmax.f32 %v1865_v22, %v1866_v19  ;;  %v1951_v22 = vrot.slane %v1950_v7, 2  ;;  %v1882_v27 = vadd.f32 %v1881_v49, %v1880_v33 }
 0x46b   :  { %v1958_v2 = vrot.slane %v1957_v44, 2 }
 0x46c   :  { %v1907_v35 = vrot.slane %v1906_v25, 4  ;;  %v1963_v47 = vrot.slane %v1962_v28, 4  ;;  %v1952_v32 = vmax.f32 %v1950_v7, %v1951_v22  ;;  %v1883_v56 = vrot.slane %v1882_v27, 1  ;;  %v2122_v22 = vld [vmem:[#allocation12 + $0x48] sm:$0xff] }
 0x46d   :  { %v1959_v42 = vmax.f32 %v1957_v44, %v1958_v2  ;;  %v1947_v44 = vmax.f32 %v1945_v58, %v1946_v3  ;;  %v2121_v2 = vld [vmem:[#allocation12 + $0x40] sm:$0xff]  ;;  %v2120_v58 = vld [vmem:[#allocation12 + $0x38] sm:$0xff] }
 0x46e   :  { %v1908_v5 = vadd.f32 %v1907_v35, %v1906_v25  ;;  %v2127_v25 = vld [vmem:[#allocation12 + $0x70] sm:$0xff]  ;;  %v1953_v13 = vrot.slane %v1952_v32, 1  ;;  %v1884_v45 = vadd.f32 %v1883_v56, %v1882_v27 }
 0x46f   :  { %v1822_v54 = vpop.permute.xlu1 %1821  ;;  %v1960_v7 = vrot.slane %v1959_v42, 1 }
 0x470   :  { %v1851_v60 = vmul.f32 %v1822_v54, %v1755_v59  ;;  %v1902_v54 = vrot.slane %v1901_v40, 2  ;;  %v1757_v59 = vmax.f32 %v3366_v39, 0.0  ;;  %v1909_v16 = vrot.slane %v1908_v5, 2  ;;  %v2126_v39 = vld [vmem:[#allocation12 + $0x68] sm:$0xff] }
 0x471   :  { %v1984_v43 = vmul.f32 %v1940_v0, %v1884_v45  ;;  %v1961_v61 = vmax.f32 %v1959_v42, %v1960_v7  ;;  %v2118_v42 = vld [vmem:[#allocation12 + $0x28] sm:$0xff] }
 0x472   :  { %v1867_v4 = vmul.f32 %v1851_v60, %v3085_v37  ;;  %v1964_v37 = vmax.f32 %v1962_v28, %v1963_v47  ;;  %v1758_v28 = vmax.f32 %v1742_v21, 0.0  ;;  %v1932_v60 = vrot.slane %v1931_v63, 1 }
 0x473   :  { %v1910_v29 = vadd.f32 %v1909_v16, %v1908_v5  ;;  %v1853_v33 = vmul.f32 %v1832_v62, %v1757_v59  ;;  %v1992_v62 = vpack.c.bf16 %v1984_v43, %v1984_v43 }
 0x474   :  { %v1965_v19 = vrot.slane %v1964_v37, 2 }
 0x475   :  { %v1869_v49 = vmul.f32 %v1853_v33, %v3101_v53 }
 0x477   :  { %v1827_v31 = vpop.permute.xlu0 %1826 }
 0x478   :  { %v1852_v36 = vmul.f32 %v1827_v31, %v1756_v10  ;;  %v2128_v10 = vld [vmem:[#allocation12 + $0x78] sm:$0xff]  ;;  %v1903_v31 = vadd.f32 %v1902_v54, %v1901_v40  ;;  %v1891_v40 = vadd.f32 %v1890_v41, %v1889_v30 }
 0x479   :  { %2133 = vmatpush.msra.mxu1 %v2128_v10 }
 0x47a   :  { %v1868_v48 = vmul.f32 %v1852_v36, %v3087_v38  ;;  %v1966_v36 = vmax.f32 %v1964_v37, %v1965_v19  ;;  %v1904_v1 = vrot.slane %v1903_v31, 1  ;;  %v2123_v37 = vld [vmem:[#allocation12 + $0x50] sm:$0xff] }
 0x47b   :  { %2134 = vmatpush.msra.mxu1 %v2127_v25 }
 0x47c   :  { %v1913_v17 = vadd.f32 %v1868_v48, %v1867_v4  ;;  %v1969_v14 = vmax.f32 %v1867_v4, %v1868_v48  ;;  %v2125_v4 = vld [vmem:[#allocation12 + $0x60] sm:$0xff]  ;;  %v1933_v48 = vmax.f32 %v1931_v63, %v1932_v60  ;;  %v1905_v52 = vadd.f32 %v1904_v1, %v1903_v31  ;;  %v2119_v60 = vld [vmem:[#allocation12 + $0x30] sm:$0xff] }
 0x47d   :  { %2135 = vmatpush.msra.mxu1 %v2126_v39  ;;  %v2028_v39 = vunpack.c.l.b16 %v1992_v62 }
 0x47e   :  { %v1914_v8 = vrot.slane %v1913_v17, 4  ;;  %v1970_v38 = vrot.slane %v1969_v14, 4  ;;  %v1983_v59 = vmul.f32 %v1933_v48, %v1877_v34  ;;  %v1987_v30 = vmul.f32 %v1961_v61, %v1905_v52  ;;  %v2550_v52 = vld [vmem:[%s3396_s13] ss:$0 sm:$0xff]  ;;  %s2180_s13 = sshll.u32 %s3397_s14, 4  ;;  %s2181_s13 = int_to_ptr.hbm [resolvable:$true] %s2180_s13 }
 0x47f   :  { %2136 = vmatpush.msra.mxu1 %v2125_v4 }
 0x480   :  { %v1915_v15 = vadd.f32 %v1914_v8, %v1913_v17  ;;  %v1971_v24 = vmax.f32 %v1969_v14, %v1970_v38  ;;  %v1911_v17 = vrot.slane %v1910_v29, 1  ;;  %v1967_v14 = vrot.slane %v1966_v36, 1 }
 0x481   :  { %v1898_v8 = vadd.f32 %v1897_v6, %v1896_v26  ;;  %v1954_v38 = vmax.f32 %v1952_v32, %v1953_v13  ;;  %2137 = vmatpush.msra.mxu1 %v2124_v12  ;;  %v1991_v26 = vpack.c.bf16 %v1983_v59, %v1983_v59  ;;  %v1995_v31 = vpack.c.bf16 %v1987_v30, %v1987_v30 }
 0x482   :  { %v1916_v23 = vrot.slane %v1915_v15, 2  ;;  %v1972_v9 = vrot.slane %v1971_v24, 2 }
 0x483   :  { %2138 = vmatpush.msra.mxu1 %v2123_v37  ;;  %v1986_v55 = vmul.f32 %v1954_v38, %v1898_v8  ;;  %v2027_v3 = vunpack.c.l.b16 %v1991_v26  ;;  %v2031_v4 = vunpack.c.l.b16 %v1995_v31  ;;  %v2113_v37 = vld [vmem:[#allocation12] sm:$0xff]  ;;  %v2549_v8 = vld [vmem:[%s3394_s11] ss:$0 sm:$0xff]  ;;  %s2810_s11 = smov [#allocation14]  }
 0x484   :  { %v1917_v46 = vadd.f32 %v1916_v23, %v1915_v15  ;;  %v1973_v35 = vmax.f32 %v1971_v24, %v1972_v9  ;;  %v1912_v15 = vadd.f32 %v1911_v17, %v1910_v29  ;;  %v1968_v24 = vmax.f32 %v1966_v36, %v1967_v14  ;;  %s2178_s27 = sshll.u32 %s2810_s11, 4  ;;  %s2179_s27 = int_to_ptr.vmem [resolvable:$true] %s2178_s27 }
 0x485   :  { %2139 = vmatpush.msra.mxu1 %v2122_v22  ;;  %v1994_v32 = vpack.c.bf16 %v1986_v55, %v1986_v55  ;;  %v2036_v48 = vsel %vm2035_vm1, %v2028_v39, %v2027_v3 }
 0x486   :  { %v1918_v57 = vrot.slane %v1917_v46, 1  ;;  %v1974_v5 = vrot.slane %v1973_v35, 1  ;;  %v1988_v23 = vmul.f32 %v1968_v24, %v1912_v15 }
 0x487   :  { %v1837_v47 = vpop.permute.xlu1 %1836  ;;  %2140 = vmatpush.msra.mxu1 %v2121_v2 }
 0x488   :  { %v1854_v50 = vmul.f32 %v1837_v47, %v1758_v28  ;;  %v1919_v11 = vadd.f32 %v1918_v57, %v1917_v46  ;;  %v1975_v54 = vmax.f32 %v1973_v35, %v1974_v5  ;;  %v1996_v34 = vpack.c.bf16 %v1988_v23, %v1988_v23  ;;  %v2115_v57 = vld [vmem:[#allocation12 + $0x10] sm:$0xff]  ;;  %v2114_v5 = vld [vmem:[#allocation12 + $0x8] sm:$0xff] }
 0x489   :  { %2141 = vmatpush.msra.mxu1 %v2120_v58  ;;  %v2030_v46 = vunpack.c.l.b16 %v1994_v32 }
 0x48a   :  { %v1870_v18 = vmul.f32 %v1854_v50, %v3099_v51  ;;  %v1985_v51 = vmul.f32 %v1947_v44, %v1891_v40  ;;  %v1989_v28 = vmul.f32 %v1975_v54, %v1919_v11  ;;  %v2032_v6 = vunpack.c.l.b16 %v1996_v34  ;;  %v2117_v40 = vld [vmem:[#allocation12 + $0x20] sm:$0xff]  ;;  %v2116_v44 = vld [vmem:[#allocation12 + $0x18] sm:$0xff] }
 0x48b   :  { %2142 = vmatpush.msra.mxu1 %v2119_v60 }
 0x48c   :  { %v1920_v21 = vadd.f32 %v1870_v18, %v1869_v49  ;;  %v1976_v63 = vmax.f32 %v1869_v49, %v1870_v18  ;;  %v1993_v25 = vpack.c.bf16 %v1985_v51, %v1985_v51  ;;  %v1997_v41 = vpack.c.bf16 %v1989_v28, %v1989_v28 }
 0x48d   :  { %2143 = vmatpush.msra.mxu1 %v2118_v42 }
 0x48e   :  { %v1921_v53 = vrot.slane %v1920_v21, 4  ;;  %v1977_v27 = vrot.slane %v1976_v63, 4  ;;  %v2029_v33 = vunpack.c.l.b16 %v1993_v25  ;;  %v2033_v45 = vunpack.c.l.b16 %v1997_v41 }
 0x48f   :  { %2144 = vmatpush.msra.mxu1 %v2117_v40 }
 0x490   :  { %v1922_v16 = vadd.f32 %v1921_v53, %v1920_v21  ;;  %v1978_v19 = vmax.f32 %v1976_v63, %v1977_v27  ;;  %v2038_v50 = vsel %vm2037_vm2, %v2029_v33, %v2036_v48 }
 0x491   :  { %v2040_v1 = vsel %vm2039_vm3, %v2030_v46, %v2038_v50  ;;  %2145 = vmatpush.msra.mxu1 %v2116_v44 }
 0x492   :  { %v1923_v9 = vrot.slane %v1922_v16, 2  ;;  %v1979_v10 = vrot.slane %v1978_v19, 2  ;;  %v2042_v7 = vsel %vm2041_vm4, %v2031_v4, %v2040_v1 }
 0x493   :  { %v2044_v17 = vsel %vm2043_vm5, %v2032_v6, %v2042_v7  ;;  %2146 = vmatpush.msra.mxu1 %v2115_v57 }
 0x494   :  { %v1924_v56 = vadd.f32 %v1923_v9, %v1922_v16  ;;  %v1980_v20 = vmax.f32 %v1978_v19, %v1979_v10  ;;  %v2046_v14 = vsel %vm2045_vm6, %v2033_v45, %v2044_v17 }
 0x495   :  { %2147 = vmatpush.msra.mxu1 %v2114_v5 }
 0x496   :  { %v1925_v29 = vrot.slane %v1924_v56, 1  ;;  %v1981_v36 = vrot.slane %v1980_v20, 1 }
 0x497   :  { %2148 = vmatpush.msra.mxu1 %v2113_v37 }
 0x498   :  { %v1926_v35 = vadd.f32 %v1925_v29, %v1924_v56  ;;  %v1982_v47 = vmax.f32 %v1980_v20, %v1981_v36 }
 0x49a   :  { %v1990_v13 = vmul.f32 %v1982_v47, %v1926_v35 }
 0x49c   :  { %v1998_v0 = vpack.c.bf16 %v1990_v13, %v1990_v13 }
 0x49e   :  { %v2034_v12 = vunpack.c.l.b16 %v1998_v0 }
 0x4a0   :  { %v2048_v49 = vsel %vm2047_vm7, %v2034_v12, %v2046_v14 }
 0x4a1   :  { %v2049_v18 = vpack.c.b16 %v2048_v49, %v2048_v49 }
 0x4a3   :  { %2107 = vmatmul.bf16.vlgmr.msrb.gmra.mxu0 %v2049_v18 }
 0x520   :  { %v2108_v38 = vpop.f32.mrf.mxu0 }
 0x521   :  { %v2109_v21 = vadd.f32 %v2549_v8, %v2108_v38 }
 0x523   :  { %2615 = vtanh.f32 %v2109_v21 }
 0x528   :  { %v2110_v63 = vpop.f32.mrf.mxu0 }
 0x529   :  { %v2616_v43 = vpop.eup %2615 }
 0x52a   :  { %2149 = vmatmul.f32.vlgmr.msra.gmra.mxu1 %v2616_v43 }
 0x5a7   :  { %v2150_v61 = vpop.f32.mrf.mxu1 }
 0x5a8   :  { %v2151_v22 = vadd.f32 %v2550_v52, %v2150_v61 }
 0x5aa   :  { %v2465_v15 = vmul.f32 -1.442695, %v2151_v22 }
 0x5ac   :  { %2617 = vpow2.f32 %v2465_v15 }
 0x5b2   :  { %v2618_v24 = vpop.eup %2617 }
 0x5b3   :  { %v2156_v53 = vadd.f32 1.0, %v2618_v24 }
 0x5b5   :  { %2619 = vrcp.f32 %v2156_v53  ;;  %v2168_v54 = vand.u32 2147483648, %v2156_v53  ;;  %v2166_v59 = vand.u32 2147483647, %v2156_v53  ;;  %vm2162_vm9 = vweird.f32 %v2156_v53 }
 0x5b7   :  { %v2169_v16 = vor.u32 1.1754944e-38, %v2168_v54  ;;  %vm2167_vm11 = vcmp.eq.f32.partialorder %v2166_v59, 8.507059e+37 }
 0x5bb   :  { %v2620_v27 = vpop.eup %2619 }
 0x5bc   :  { %v2158_v51 = vmul.f32 %v2620_v27, %v2156_v53  ;;  %vm2163_vm8 = vweird.f32 %v2620_v27 }
 0x5bd   :  { %vm2164_vm10 = vmor %vm2162_vm9, %vm2163_vm8 }
 0x5be   :  { %v2159_v11 = vsub.f32 1.0, %v2158_v51 }
 0x5c0   :  { %v2160_v2 = vmul.f32 %v2620_v27, %v2159_v11 }
 0x5c2   :  { %v2161_v55 = vadd.f32 %v2620_v27, %v2160_v2 }
 0x5c4   :  { %v2165_v19 = vsel %vm2164_vm10, %v2620_v27, %v2161_v55 }
 0x5c5   :  { %v2170_v30 = vsel %vm2167_vm11, %v2169_v16, %v2165_v19 }
 0x5c6   :  { %2172 = vst [vmem:[#allocation14] sm:$0xff] %v2170_v30 }
 0x5c7   :  { %2183 = dma.vmem_to_hbm [thread:$0]  %s2179_s27, 128, %s2181_s13, [#allocation5]  }
 0x5c8   :  { %2797 = dma.done.wait [#allocation5], 128  }
 0x5c9   :  { %2798 = vsyncadd [#allocation5], 4294967168 }
 0x5ca   :  { %2188 = vsyncpa [#allocation4], 1 }
 0x5cb   :  { %2189 = vsyncpa [#allocation7], 1 }
 0x5cc   :  { %2190 = vsyncpa [#allocation10], 1 }
 0x5cd   :  { %2191 = vsyncpa [#allocation13], 1 }
 0x5ce   :  { %2192 = vsyncpa [#allocation5], 1 }

</bundles_post_ra>
